<compile_context>
chip_gen: v7x
topology: tpu7x:2x2x1
jax: 0.10.0
libtpu: 0.0.40
codegen_flags: <defaults>
</compile_context>

<pallas_src>
import jax
import jax.numpy as jnp
from jax.experimental import pallas as pl
from jax.experimental.pallas import tpu as pltpu

LN_EPS = 1e-5  # PyTorch nn.LayerNorm default


def _round_up(x, m):
    return ((x + m - 1) // m) * m


def _make_kernel(image_dim, struct_dim, fused_dim):
    F = fused_dim
    # static row offsets into the packed weight slab
    o_ws = image_dim
    o_w1 = o_ws + struct_dim
    o_w2 = o_w1 + F
    o_wfc = o_w2 + F
    o_fc2 = o_wfc + F
    o_end = o_fc2 + F

    def kernel(img_ref, str_ref, w_ref, b_ref, out_ref):
        # --- packed parameters (weights bf16, biases / LN affine f32) -------
        wi = w_ref[0:o_ws, :]                # (image_dim, F)
        ws = w_ref[o_ws:o_w1, :]             # (struct_dim, F)
        w1 = w_ref[o_w1:o_w2, :]             # (F, F)  folded image<-struct attention
        w2 = w_ref[o_w2:o_wfc, :]            # (F, F)  folded struct<-image attention
        wfc_top = w_ref[o_wfc:o_fc2, :]      # (F, F)  fc weight, x1 half
        wfc_bot = w_ref[o_fc2:o_end, :]      # (F, F)  fc weight, x2 half

        bi, bs = b_ref[0:1, :], b_ref[1:2, :]
        c1, c2 = b_ref[2:3, :], b_ref[3:4, :]
        bf = b_ref[4:5, :]
        gamma, beta = b_ref[5:6, :], b_ref[6:7, :]

        def layer_norm(x):                   # shared LN (single nn.LayerNorm), f32 math
            mu = jnp.mean(x, axis=-1, keepdims=True)
            xc = x - mu
            var = jnp.mean(xc * xc, axis=-1, keepdims=True)
            return xc * jax.lax.rsqrt(var + LN_EPS) * gamma + beta

        img = img_ref[...].astype(jnp.bfloat16)
        st = str_ref[...].astype(jnp.bfloat16)

        # --- input projections (bf16 in, f32 accumulate on MXU) -------------
        img_p = jnp.dot(img, wi, preferred_element_type=jnp.float32) + bi
        str_p = jnp.dot(st, ws, preferred_element_type=jnp.float32) + bs

        # --- cross attention, seq_len == 1 => softmax == 1 (exact fold) -----
        img_attn = jnp.dot(str_p.astype(jnp.bfloat16), w1,
                           preferred_element_type=jnp.float32) + c1
        str_attn = jnp.dot(img_p.astype(jnp.bfloat16), w2,
                           preferred_element_type=jnp.float32) + c2

        # --- residual + shared LayerNorm (dropout = identity in eval) -------
        x1 = layer_norm(img_p + img_attn)
        x2 = layer_norm(str_p + str_attn)

        # --- fc(concat([x1,x2])) without materializing the (tm,2F) concat ---
        fused = (jnp.dot(x1.astype(jnp.bfloat16), wfc_top,
                         preferred_element_type=jnp.float32)
                 + jnp.dot(x2.astype(jnp.bfloat16), wfc_bot,
                           preferred_element_type=jnp.float32) + bf)
        out_ref[...] = jnp.maximum(layer_norm(fused), 0.0)

    return kernel


def fusion_forward(image_features, structured_features, params, *, block_b=1024):
    B, image_dim = image_features.shape
    struct_dim = structured_features.shape[1]
    w_slab = params["w_slab"]
    b_slab = params["b_slab"]
    F = b_slab.shape[-1]
    w_rows = w_slab.shape[0]

    # Batch tile selection:
    #  * B < 16 : whole batch in one block (block shape == full array dims).
    #  * else   : at least two grid steps (so both v7x TensorCores get work),
    #             tm a multiple of 8, capped at block_b.
    if B < 16:
        tm = B
    else:
        tm = min(block_b, _round_up(pl.cdiv(B, 2), 8))
    grid_b = pl.cdiv(B, tm)
    # No jnp.pad of the inputs: Pallas masks the tail block's write and any
    # garbage rows read past B stay in rows that are never written out.

    kernel = _make_kernel(image_dim, struct_dim, F)

    flops = 2 * B * F * (image_dim + struct_dim + 4 * F)
    bytes_accessed = (w_slab.size * 2 + b_slab.size * 4 +
                      (image_features.size + structured_features.size + B * F) * 4)
    cost = pl.CostEstimate(flops=flops, transcendentals=3 * B,
                           bytes_accessed=bytes_accessed)

    # Explicit VMEM budget: double-buffered activation tiles + resident slabs
    # + headroom for in-kernel f32/bf16 temporaries.  Cap at 64 MiB (v7x
    # physical VMEM) so the same budget is valid on v5e/v6e/v7x.
    act_bytes = 2 * tm * (image_dim + struct_dim + F) * 4     # in + out, 2 buffers
    slab_bytes = 2 * (w_slab.size * 2 + b_slab.size * 4)
    temp_bytes = 12 * tm * F * 4
    vmem_limit = min(max(act_bytes + slab_bytes + temp_bytes, 16 << 20), 64 << 20)

    def build(single_buffer_weights):
        slab_mode = {}
        if single_buffer_weights:
            # Constant index_map -> no "next block" ever needed; halve slab VMEM.
            slab_mode = dict(pipeline_mode=pl.Buffered(1))
        return pl.pallas_call(
            kernel,
            out_shape=jax.ShapeDtypeStruct((B, F), jnp.float32),
            grid_spec=pltpu.PrefetchScalarGridSpec(
                num_scalar_prefetch=0,
                grid=(grid_b,),
                in_specs=[
                    pl.BlockSpec((tm, image_dim), lambda i: (i, 0)),
                    pl.BlockSpec((tm, struct_dim), lambda i: (i, 0)),
                    # parameter slabs stay resident across the batch grid
                    pl.BlockSpec((w_rows, F), lambda i: (0, 0), **slab_mode),
                    pl.BlockSpec((b_slab.shape[0], F), lambda i: (0, 0), **slab_mode),
                ],
                out_specs=pl.BlockSpec((tm, F), lambda i: (i, 0)),
            ),
            compiler_params=pltpu.CompilerParams(
                dimension_semantics=("parallel",),
                vmem_limit_bytes=vmem_limit),
            cost_estimate=cost,
        )

    try:
        out = build(True)(image_features, structured_features, w_slab, b_slab)
    except Exception:
        # pl.Buffered(1) on a BlockSpec not supported by this jax build ->
        # fall back to default double-buffered slabs (slabs are tiny anyway).
        out = build(False)(image_features, structured_features, w_slab, b_slab)
    return out


def init_params(key, image_dim, struct_dim, fused_dim):
    """Synthetic PyTorch-shaped parameters, folded + packed for the kernel."""
    F = fused_dim
    assert F % 128 == 0, "fused_dim must be a multiple of 128 (lane axis)"
    assert image_dim % 16 == 0 and struct_dim % 16 == 0, \
        "projection dims must be multiples of 16 (bf16 sublane packing)"

    ks = jax.random.split(key, 14)
    s = 0.02
    w = lambda k, shape: jax.random.normal(k, shape, jnp.float32) * s

    # nn.Linear stores weight as (out, in); MHA in_proj is (3F, F).
    image_proj_w, image_proj_b = w(ks[0], (F, image_dim)), w(ks[1], (F,))
    struct_proj_w, struct_proj_b = w(ks[2], (F, struct_dim)), w(ks[3], (F,))
    i2s_in_w, i2s_in_b = w(ks[4], (3 * F, F)), w(ks[5], (3 * F,))
    i2s_out_w, i2s_out_b = w(ks[6], (F, F)), w(ks[7], (F,))
    s2i_in_w, s2i_in_b = w(ks[8], (3 * F, F)), w(ks[9], (3 * F,))
    s2i_out_w, s2i_out_b = w(ks[10], (F, F)), w(ks[11], (F,))
    fc_w, fc_b = w(ks[12], (F, 2 * F)), w(ks[13], (F,))

    # --- constant-fold the seq_len==1 attention chains (exact) --------------
    wi = image_proj_w.T                                   # (image_dim, F)
    ws = struct_proj_w.T                                  # (struct_dim, F)

    wv1_T, bv1 = i2s_in_w[2 * F:3 * F, :].T, i2s_in_b[2 * F:3 * F]
    wo1_T, bo1 = i2s_out_w.T, i2s_out_b
    W1 = wv1_T @ wo1_T                                    # (F, F)
    c1 = bv1 @ wo1_T + bo1                                # (F,)

    wv2_T, bv2 = s2i_in_w[2 * F:3 * F, :].T, s2i_in_b[2 * F:3 * F]
    wo2_T, bo2 = s2i_out_w.T, s2i_out_b
    W2 = wv2_T @ wo2_T
    c2 = bv2 @ wo2_T + bo2

    wfc = fc_w.T                                          # (2F, F); rows [:F] -> x1, [F:] -> x2

    ln_gamma = jnp.ones((F,), jnp.float32)
    ln_beta = jnp.zeros((F,), jnp.float32)

    # --- pack: one bf16 weight slab, one f32 bias/affine slab ----------------
    w_slab = jnp.concatenate([wi, ws, W1, W2, wfc], axis=0).astype(jnp.bfloat16)
    b_slab = jnp.stack(
        [image_proj_b, struct_proj_b, c1, c2, fc_b, ln_gamma, ln_beta,
         jnp.zeros((F,), jnp.float32)],            # pad to 8 sublane rows
        axis=0).astype(jnp.float32)

    return {"w_slab": w_slab, "b_slab": b_slab}


if __name__ == "__main__":
    # Small shapes consistent with the module's forward:
    #   image_features: (B, image_dim), structured_features: (B, struct_dim)
    batch, image_dim, struct_dim, fused_dim = 8, 128, 64, 128

    key = jax.random.PRNGKey(0)
    k_img, k_str, k_par = jax.random.split(key, 3)
    image_features = jax.random.normal(k_img, (batch, image_dim), jnp.float32)
    structured_features = jax.random.normal(k_str, (batch, struct_dim), jnp.float32)

    params = init_params(k_par, image_dim, struct_dim, fused_dim)

    out = fusion_forward(image_features, structured_features, params)
    out = jax.block_until_ready(out)
    assert out.shape == (batch, fused_dim)
    assert bool(jnp.all(jnp.isfinite(out)))
    print("KERNEL_OK")
</pallas_src>

<mosaic_0001>
module attributes {stable_mosaic.version = 11 : i64} {
  func.func @kernel(%arg0: i32, %arg1: memref<8x128xf32, #tpu.memory_space<vmem>>, %arg2: memref<8x64xf32, #tpu.memory_space<vmem>>, %arg3: memref<704x128xbf16, #tpu.memory_space<vmem>>, %arg4: memref<8x128xf32, #tpu.memory_space<vmem>>, %arg5: memref<8x128xf32, #tpu.memory_space<vmem>>) attributes {dimension_semantics = [#tpu.dimension_semantics<parallel>], iteration_bounds = array<i64: 1>, scalar_prefetch = 0 : i64, scratch_operands = 0 : i64, tpu.core_type = #tpu.core_type<tc>, window_params = [{transform_indices = @transform_0, window_bounds = array<i64: 8, 128>}, {transform_indices = @transform_1, window_bounds = array<i64: 8, 64>}, {pipeline_mode = #tpu.pipeline_mode<synchronous>, transform_indices = @transform_2, window_bounds = array<i64: 704, 128>}, {pipeline_mode = #tpu.pipeline_mode<synchronous>, transform_indices = @transform_3, window_bounds = array<i64: 8, 128>}, {transform_indices = @transform_4, window_bounds = array<i64: 8, 128>}]} {
    %c0 = arith.constant 0 : index
    %c0_0 = arith.constant 0 : index
    %0 = vector.load %arg3[%c0, %c0_0] : memref<704x128xbf16, #tpu.memory_space<vmem>>, vector<128x128xbf16>
    %c128 = arith.constant 128 : index
    %c0_1 = arith.constant 0 : index
    %1 = vector.load %arg3[%c128, %c0_1] : memref<704x128xbf16, #tpu.memory_space<vmem>>, vector<64x128xbf16>
    %c192 = arith.constant 192 : index
    %c0_2 = arith.constant 0 : index
    %2 = vector.load %arg3[%c192, %c0_2] : memref<704x128xbf16, #tpu.memory_space<vmem>>, vector<128x128xbf16>
    %c320 = arith.constant 320 : index
    %c0_3 = arith.constant 0 : index
    %3 = vector.load %arg3[%c320, %c0_3] : memref<704x128xbf16, #tpu.memory_space<vmem>>, vector<128x128xbf16>
    %c448 = arith.constant 448 : index
    %c0_4 = arith.constant 0 : index
    %4 = vector.load %arg3[%c448, %c0_4] : memref<704x128xbf16, #tpu.memory_space<vmem>>, vector<128x128xbf16>
    %c576 = arith.constant 576 : index
    %c0_5 = arith.constant 0 : index
    %5 = vector.load %arg3[%c576, %c0_5] : memref<704x128xbf16, #tpu.memory_space<vmem>>, vector<128x128xbf16>
    %c0_6 = arith.constant 0 : index
    %c0_7 = arith.constant 0 : index
    %6 = vector.load %arg4[%c0_6, %c0_7] : memref<8x128xf32, #tpu.memory_space<vmem>>, vector<1x128xf32>
    %c1 = arith.constant 1 : index
    %c0_8 = arith.constant 0 : index
    %7 = vector.load %arg4[%c1, %c0_8] : memref<8x128xf32, #tpu.memory_space<vmem>>, vector<1x128xf32>
    %c2 = arith.constant 2 : index
    %c0_9 = arith.constant 0 : index
    %8 = vector.load %arg4[%c2, %c0_9] : memref<8x128xf32, #tpu.memory_space<vmem>>, vector<1x128xf32>
    %c3 = arith.constant 3 : index
    %c0_10 = arith.constant 0 : index
    %9 = vector.load %arg4[%c3, %c0_10] : memref<8x128xf32, #tpu.memory_space<vmem>>, vector<1x128xf32>
    %c4 = arith.constant 4 : index
    %c0_11 = arith.constant 0 : index
    %10 = vector.load %arg4[%c4, %c0_11] : memref<8x128xf32, #tpu.memory_space<vmem>>, vector<1x128xf32>
    %c5 = arith.constant 5 : index
    %c0_12 = arith.constant 0 : index
    %11 = vector.load %arg4[%c5, %c0_12] : memref<8x128xf32, #tpu.memory_space<vmem>>, vector<1x128xf32>
    %c6 = arith.constant 6 : index
    %c0_13 = arith.constant 0 : index
    %12 = vector.load %arg4[%c6, %c0_13] : memref<8x128xf32, #tpu.memory_space<vmem>>, vector<1x128xf32>
    %c0_14 = arith.constant 0 : index
    %c0_15 = arith.constant 0 : index
    %13 = vector.load %arg1[%c0_14, %c0_15] : memref<8x128xf32, #tpu.memory_space<vmem>>, vector<8x128xf32>
    %14 = arith.truncf %13 : vector<8x128xf32> to vector<8x128xbf16>
    %c0_16 = arith.constant 0 : index
    %c0_17 = arith.constant 0 : index
    %15 = vector.load %arg2[%c0_16, %c0_17] : memref<8x64xf32, #tpu.memory_space<vmem>>, vector<8x64xf32>
    %16 = arith.truncf %15 : vector<8x64xf32> to vector<8x64xbf16>
    %cst = arith.constant dense<0.000000e+00> : vector<8x128xf32>
    %17 = tpu.matmul %14, %0, %cst {dimension_numbers = #tpu.dot_dimension_numbers<[1], [0], [0], [1], [0, 0, 1, 1], [], []>} : vector<8x128xbf16>, vector<128x128xbf16>, vector<8x128xf32> -> vector<8x128xf32>
    %18 = vector.broadcast %6 : vector<1x128xf32> to vector<8x128xf32>
    %19 = arith.addf %17, %18 : vector<8x128xf32>
    %cst_18 = arith.constant dense<0.000000e+00> : vector<8x128xf32>
    %20 = tpu.matmul %16, %1, %cst_18 {dimension_numbers = #tpu.dot_dimension_numbers<[1], [0], [0], [1], [0, 0, 1, 1], [], []>} : vector<8x64xbf16>, vector<64x128xbf16>, vector<8x128xf32> -> vector<8x128xf32>
    %21 = vector.broadcast %7 : vector<1x128xf32> to vector<8x128xf32>
    %22 = arith.addf %20, %21 : vector<8x128xf32>
    %23 = arith.truncf %22 : vector<8x128xf32> to vector<8x128xbf16>
    %cst_19 = arith.constant dense<0.000000e+00> : vector<8x128xf32>
    %24 = tpu.matmul %23, %2, %cst_19 {dimension_numbers = #tpu.dot_dimension_numbers<[1], [0], [0], [1], [0, 0, 1, 1], [], []>} : vector<8x128xbf16>, vector<128x128xbf16>, vector<8x128xf32> -> vector<8x128xf32>
    %25 = vector.broadcast %8 : vector<1x128xf32> to vector<8x128xf32>
    %26 = arith.addf %24, %25 : vector<8x128xf32>
    %27 = arith.truncf %19 : vector<8x128xf32> to vector<8x128xbf16>
    %cst_20 = arith.constant dense<0.000000e+00> : vector<8x128xf32>
    %28 = tpu.matmul %27, %3, %cst_20 {dimension_numbers = #tpu.dot_dimension_numbers<[1], [0], [0], [1], [0, 0, 1, 1], [], []>} : vector<8x128xbf16>, vector<128x128xbf16>, vector<8x128xf32> -> vector<8x128xf32>
    %29 = vector.broadcast %9 : vector<1x128xf32> to vector<8x128xf32>
    %30 = arith.addf %28, %29 : vector<8x128xf32>
    %31 = arith.addf %19, %26 : vector<8x128xf32>
    %cst_21 = arith.constant dense<0.000000e+00> : vector<8xf32>
    %32 = vector.multi_reduction <add>, %31, %cst_21 [1] : vector<8x128xf32> to vector<8xf32>
    %33 = vector.shape_cast %32 : vector<8xf32> to vector<8x1xf32>
    %cst_22 = arith.constant 1.280000e+02 : f32
    %34 = vector.broadcast %cst_22 : f32 to vector<8x1xf32>
    %35 = arith.divf %33, %34 : vector<8x1xf32>
    %36 = vector.broadcast %35 : vector<8x1xf32> to vector<8x128xf32>
    %37 = arith.subf %31, %36 : vector<8x128xf32>
    %38 = arith.mulf %37, %37 : vector<8x128xf32>
    %cst_23 = arith.constant dense<0.000000e+00> : vector<8xf32>
    %39 = vector.multi_reduction <add>, %38, %cst_23 [1] : vector<8x128xf32> to vector<8xf32>
    %40 = vector.shape_cast %39 : vector<8xf32> to vector<8x1xf32>
    %cst_24 = arith.constant 1.280000e+02 : f32
    %41 = vector.broadcast %cst_24 : f32 to vector<8x1xf32>
    %42 = arith.divf %40, %41 : vector<8x1xf32>
    %cst_25 = arith.constant 9.99999974E-6 : f32
    %43 = vector.broadcast %cst_25 : f32 to vector<8x1xf32>
    %44 = arith.addf %42, %43 : vector<8x1xf32>
    %45 = math.rsqrt %44 : vector<8x1xf32>
    %46 = vector.broadcast %45 : vector<8x1xf32> to vector<8x128xf32>
    %47 = arith.mulf %37, %46 : vector<8x128xf32>
    %48 = vector.broadcast %11 : vector<1x128xf32> to vector<8x128xf32>
    %49 = arith.mulf %47, %48 : vector<8x128xf32>
    %50 = vector.broadcast %12 : vector<1x128xf32> to vector<8x128xf32>
    %51 = arith.addf %49, %50 : vector<8x128xf32>
    %52 = arith.addf %22, %30 : vector<8x128xf32>
    %cst_26 = arith.constant dense<0.000000e+00> : vector<8xf32>
    %53 = vector.multi_reduction <add>, %52, %cst_26 [1] : vector<8x128xf32> to vector<8xf32>
    %54 = vector.shape_cast %53 : vector<8xf32> to vector<8x1xf32>
    %cst_27 = arith.constant 1.280000e+02 : f32
    %55 = vector.broadcast %cst_27 : f32 to vector<8x1xf32>
    %56 = arith.divf %54, %55 : vector<8x1xf32>
    %57 = vector.broadcast %56 : vector<8x1xf32> to vector<8x128xf32>
    %58 = arith.subf %52, %57 : vector<8x128xf32>
    %59 = arith.mulf %58, %58 : vector<8x128xf32>
    %cst_28 = arith.constant dense<0.000000e+00> : vector<8xf32>
    %60 = vector.multi_reduction <add>, %59, %cst_28 [1] : vector<8x128xf32> to vector<8xf32>
    %61 = vector.shape_cast %60 : vector<8xf32> to vector<8x1xf32>
    %cst_29 = arith.constant 1.280000e+02 : f32
    %62 = vector.broadcast %cst_29 : f32 to vector<8x1xf32>
    %63 = arith.divf %61, %62 : vector<8x1xf32>
    %cst_30 = arith.constant 9.99999974E-6 : f32
    %64 = vector.broadcast %cst_30 : f32 to vector<8x1xf32>
    %65 = arith.addf %63, %64 : vector<8x1xf32>
    %66 = math.rsqrt %65 : vector<8x1xf32>
    %67 = vector.broadcast %66 : vector<8x1xf32> to vector<8x128xf32>
    %68 = arith.mulf %58, %67 : vector<8x128xf32>
    %69 = vector.broadcast %11 : vector<1x128xf32> to vector<8x128xf32>
    %70 = arith.mulf %68, %69 : vector<8x128xf32>
    %71 = vector.broadcast %12 : vector<1x128xf32> to vector<8x128xf32>
    %72 = arith.addf %70, %71 : vector<8x128xf32>
    %73 = arith.truncf %51 : vector<8x128xf32> to vector<8x128xbf16>
    %cst_31 = arith.constant dense<0.000000e+00> : vector<8x128xf32>
    %74 = tpu.matmul %73, %4, %cst_31 {dimension_numbers = #tpu.dot_dimension_numbers<[1], [0], [0], [1], [0, 0, 1, 1], [], []>} : vector<8x128xbf16>, vector<128x128xbf16>, vector<8x128xf32> -> vector<8x128xf32>
    %75 = arith.truncf %72 : vector<8x128xf32> to vector<8x128xbf16>
    %cst_32 = arith.constant dense<0.000000e+00> : vector<8x128xf32>
    %76 = tpu.matmul %75, %5, %cst_32 {dimension_numbers = #tpu.dot_dimension_numbers<[1], [0], [0], [1], [0, 0, 1, 1], [], []>} : vector<8x128xbf16>, vector<128x128xbf16>, vector<8x128xf32> -> vector<8x128xf32>
    %77 = arith.addf %74, %76 : vector<8x128xf32>
    %78 = vector.broadcast %10 : vector<1x128xf32> to vector<8x128xf32>
    %79 = arith.addf %77, %78 : vector<8x128xf32>
    %cst_33 = arith.constant dense<0.000000e+00> : vector<8xf32>
    %80 = vector.multi_reduction <add>, %79, %cst_33 [1] : vector<8x128xf32> to vector<8xf32>
    %81 = vector.shape_cast %80 : vector<8xf32> to vector<8x1xf32>
    %cst_34 = arith.constant 1.280000e+02 : f32
    %82 = vector.broadcast %cst_34 : f32 to vector<8x1xf32>
    %83 = arith.divf %81, %82 : vector<8x1xf32>
    %84 = vector.broadcast %83 : vector<8x1xf32> to vector<8x128xf32>
    %85 = arith.subf %79, %84 : vector<8x128xf32>
    %86 = arith.mulf %85, %85 : vector<8x128xf32>
    %cst_35 = arith.constant dense<0.000000e+00> : vector<8xf32>
    %87 = vector.multi_reduction <add>, %86, %cst_35 [1] : vector<8x128xf32> to vector<8xf32>
    %88 = vector.shape_cast %87 : vector<8xf32> to vector<8x1xf32>
    %cst_36 = arith.constant 1.280000e+02 : f32
    %89 = vector.broadcast %cst_36 : f32 to vector<8x1xf32>
    %90 = arith.divf %88, %89 : vector<8x1xf32>
    %cst_37 = arith.constant 9.99999974E-6 : f32
    %91 = vector.broadcast %cst_37 : f32 to vector<8x1xf32>
    %92 = arith.addf %90, %91 : vector<8x1xf32>
    %93 = math.rsqrt %92 : vector<8x1xf32>
    %94 = vector.broadcast %93 : vector<8x1xf32> to vector<8x128xf32>
    %95 = arith.mulf %85, %94 : vector<8x128xf32>
    %96 = vector.broadcast %11 : vector<1x128xf32> to vector<8x128xf32>
    %97 = arith.mulf %95, %96 : vector<8x128xf32>
    %98 = vector.broadcast %12 : vector<1x128xf32> to vector<8x128xf32>
    %99 = arith.addf %97, %98 : vector<8x128xf32>
    %cst_38 = arith.constant 0.000000e+00 : f32
    %100 = vector.broadcast %cst_38 : f32 to vector<8x128xf32>
    %101 = arith.maximumf %99, %100 : vector<8x128xf32>
    %c0_39 = arith.constant 0 : index
    %c0_40 = arith.constant 0 : index
    %102 = vector.load %arg5[%c0_39, %c0_40] : memref<8x128xf32, #tpu.memory_space<vmem>>, vector<8x128xf32>
    tpu.vector_store %arg5[%c0_39, %c0_40], %101 {strides = array<i32>} : memref<8x128xf32, #tpu.memory_space<vmem>>, vector<8x128xf32>,
    return
  }
  func.func @transform_0(%arg0: i32) -> (i32, i32) {
    %c0_i32 = arith.constant 0 : i32
    %c0_i32_0 = arith.constant 0 : i32
    return %arg0, %c0_i32 : i32, i32
  }
  func.func @transform_1(%arg0: i32) -> (i32, i32) {
    %c0_i32 = arith.constant 0 : i32
    %c0_i32_0 = arith.constant 0 : i32
    return %arg0, %c0_i32 : i32, i32
  }
  func.func @transform_2(%arg0: i32) -> (i32, i32) {
    %c0_i32 = arith.constant 0 : i32
    %c0_i32_0 = arith.constant 0 : i32
    %c0_i32_1 = arith.constant 0 : i32
    return %c0_i32, %c0_i32_0 : i32, i32
  }
  func.func @transform_3(%arg0: i32) -> (i32, i32) {
    %c0_i32 = arith.constant 0 : i32
    %c0_i32_0 = arith.constant 0 : i32
    %c0_i32_1 = arith.constant 0 : i32
    return %c0_i32, %c0_i32_0 : i32, i32
  }
  func.func @transform_4(%arg0: i32) -> (i32, i32) {
    %c0_i32 = arith.constant 0 : i32
    %c0_i32_0 = arith.constant 0 : i32
    return %arg0, %c0_i32 : i32, i32
  }
}

module attributes {stable_mosaic.version = 11 : i64} {
  func.func @kernel(%arg0: i32, %arg1: memref<8x128xf32, #tpu.memory_space<vmem>>, %arg2: memref<8x64xf32, #tpu.memory_space<vmem>>, %arg3: memref<704x128xbf16, #tpu.memory_space<vmem>>, %arg4: memref<8x128xf32, #tpu.memory_space<vmem>>, %arg5: memref<8x128xf32, #tpu.memory_space<vmem>>) attributes {dimension_semantics = [#tpu.dimension_semantics<parallel>], iteration_bounds = array<i64: 1>, scalar_prefetch = 0 : i64, scratch_operands = 0 : i64, tpu.core_type = #tpu.core_type<tc>, window_params = [{transform_indices = @transform_0, window_bounds = array<i64: 8, 128>}, {transform_indices = @transform_1, window_bounds = array<i64: 8, 64>}, {pipeline_mode = #tpu.pipeline_mode<synchronous>, transform_indices = @transform_2, window_bounds = array<i64: 704, 128>}, {pipeline_mode = #tpu.pipeline_mode<synchronous>, transform_indices = @transform_3, window_bounds = array<i64: 8, 128>}, {transform_indices = @transform_4, window_bounds = array<i64: 8, 128>}]} {
    %c0 = arith.constant 0 : index
    %c0_0 = arith.constant 0 : index
    %0 = vector.load %arg3[%c0, %c0_0] : memref<704x128xbf16, #tpu.memory_space<vmem>>, vector<128x128xbf16>
    %c128 = arith.constant 128 : index
    %c0_1 = arith.constant 0 : index
    %1 = vector.load %arg3[%c128, %c0_1] : memref<704x128xbf16, #tpu.memory_space<vmem>>, vector<64x128xbf16>
    %c192 = arith.constant 192 : index
    %c0_2 = arith.constant 0 : index
    %2 = vector.load %arg3[%c192, %c0_2] : memref<704x128xbf16, #tpu.memory_space<vmem>>, vector<128x128xbf16>
    %c320 = arith.constant 320 : index
    %c0_3 = arith.constant 0 : index
    %3 = vector.load %arg3[%c320, %c0_3] : memref<704x128xbf16, #tpu.memory_space<vmem>>, vector<128x128xbf16>
    %c448 = arith.constant 448 : index
    %c0_4 = arith.constant 0 : index
    %4 = vector.load %arg3[%c448, %c0_4] : memref<704x128xbf16, #tpu.memory_space<vmem>>, vector<128x128xbf16>
    %c576 = arith.constant 576 : index
    %c0_5 = arith.constant 0 : index
    %5 = vector.load %arg3[%c576, %c0_5] : memref<704x128xbf16, #tpu.memory_space<vmem>>, vector<128x128xbf16>
    %c0_6 = arith.constant 0 : index
    %c0_7 = arith.constant 0 : index
    %6 = vector.load %arg4[%c0_6, %c0_7] : memref<8x128xf32, #tpu.memory_space<vmem>>, vector<1x128xf32>
    %c1 = arith.constant 1 : index
    %c0_8 = arith.constant 0 : index
    %7 = vector.load %arg4[%c1, %c0_8] : memref<8x128xf32, #tpu.memory_space<vmem>>, vector<1x128xf32>
    %c2 = arith.constant 2 : index
    %c0_9 = arith.constant 0 : index
    %8 = vector.load %arg4[%c2, %c0_9] : memref<8x128xf32, #tpu.memory_space<vmem>>, vector<1x128xf32>
    %c3 = arith.constant 3 : index
    %c0_10 = arith.constant 0 : index
    %9 = vector.load %arg4[%c3, %c0_10] : memref<8x128xf32, #tpu.memory_space<vmem>>, vector<1x128xf32>
    %c4 = arith.constant 4 : index
    %c0_11 = arith.constant 0 : index
    %10 = vector.load %arg4[%c4, %c0_11] : memref<8x128xf32, #tpu.memory_space<vmem>>, vector<1x128xf32>
    %c5 = arith.constant 5 : index
    %c0_12 = arith.constant 0 : index
    %11 = vector.load %arg4[%c5, %c0_12] : memref<8x128xf32, #tpu.memory_space<vmem>>, vector<1x128xf32>
    %c6 = arith.constant 6 : index
    %c0_13 = arith.constant 0 : index
    %12 = vector.load %arg4[%c6, %c0_13] : memref<8x128xf32, #tpu.memory_space<vmem>>, vector<1x128xf32>
    %c0_14 = arith.constant 0 : index
    %c0_15 = arith.constant 0 : index
    %13 = vector.load %arg1[%c0_14, %c0_15] : memref<8x128xf32, #tpu.memory_space<vmem>>, vector<8x128xf32>
    %14 = arith.truncf %13 : vector<8x128xf32> to vector<8x128xbf16>
    %c0_16 = arith.constant 0 : index
    %c0_17 = arith.constant 0 : index
    %15 = vector.load %arg2[%c0_16, %c0_17] : memref<8x64xf32, #tpu.memory_space<vmem>>, vector<8x64xf32>
    %16 = arith.truncf %15 : vector<8x64xf32> to vector<8x64xbf16>
    %cst = arith.constant dense<0.000000e+00> : vector<8x128xf32>
    %17 = tpu.matmul %14, %0, %cst {dimension_numbers = #tpu.dot_dimension_numbers<[1], [0], [0], [1], [0, 0, 1, 1], [], []>} : vector<8x128xbf16>, vector<128x128xbf16>, vector<8x128xf32> -> vector<8x128xf32>
    %18 = vector.broadcast %6 : vector<1x128xf32> to vector<8x128xf32>
    %19 = arith.addf %17, %18 : vector<8x128xf32>
    %cst_18 = arith.constant dense<0.000000e+00> : vector<8x128xf32>
    %20 = tpu.matmul %16, %1, %cst_18 {dimension_numbers = #tpu.dot_dimension_numbers<[1], [0], [0], [1], [0, 0, 1, 1], [], []>} : vector<8x64xbf16>, vector<64x128xbf16>, vector<8x128xf32> -> vector<8x128xf32>
    %21 = vector.broadcast %7 : vector<1x128xf32> to vector<8x128xf32>
    %22 = arith.addf %20, %21 : vector<8x128xf32>
    %23 = arith.truncf %22 : vector<8x128xf32> to vector<8x128xbf16>
    %cst_19 = arith.constant dense<0.000000e+00> : vector<8x128xf32>
    %24 = tpu.matmul %23, %2, %cst_19 {dimension_numbers = #tpu.dot_dimension_numbers<[1], [0], [0], [1], [0, 0, 1, 1], [], []>} : vector<8x128xbf16>, vector<128x128xbf16>, vector<8x128xf32> -> vector<8x128xf32>
    %25 = vector.broadcast %8 : vector<1x128xf32> to vector<8x128xf32>
    %26 = arith.addf %24, %25 : vector<8x128xf32>
    %27 = arith.truncf %19 : vector<8x128xf32> to vector<8x128xbf16>
    %cst_20 = arith.constant dense<0.000000e+00> : vector<8x128xf32>
    %28 = tpu.matmul %27, %3, %cst_20 {dimension_numbers = #tpu.dot_dimension_numbers<[1], [0], [0], [1], [0, 0, 1, 1], [], []>} : vector<8x128xbf16>, vector<128x128xbf16>, vector<8x128xf32> -> vector<8x128xf32>
    %29 = vector.broadcast %9 : vector<1x128xf32> to vector<8x128xf32>
    %30 = arith.addf %28, %29 : vector<8x128xf32>
    %31 = arith.addf %19, %26 : vector<8x128xf32>
    %cst_21 = arith.constant dense<0.000000e+00> : vector<8xf32>
    %32 = vector.multi_reduction <add>, %31, %cst_21 [1] : vector<8x128xf32> to vector<8xf32>
    %33 = vector.shape_cast %32 : vector<8xf32> to vector<8x1xf32>
    %cst_22 = arith.constant 1.280000e+02 : f32
    %34 = vector.broadcast %cst_22 : f32 to vector<8x1xf32>
    %35 = arith.divf %33, %34 : vector<8x1xf32>
    %36 = vector.broadcast %35 : vector<8x1xf32> to vector<8x128xf32>
    %37 = arith.subf %31, %36 : vector<8x128xf32>
    %38 = arith.mulf %37, %37 : vector<8x128xf32>
    %cst_23 = arith.constant dense<0.000000e+00> : vector<8xf32>
    %39 = vector.multi_reduction <add>, %38, %cst_23 [1] : vector<8x128xf32> to vector<8xf32>
    %40 = vector.shape_cast %39 : vector<8xf32> to vector<8x1xf32>
    %cst_24 = arith.constant 1.280000e+02 : f32
    %41 = vector.broadcast %cst_24 : f32 to vector<8x1xf32>
    %42 = arith.divf %40, %41 : vector<8x1xf32>
    %cst_25 = arith.constant 9.99999974E-6 : f32
    %43 = vector.broadcast %cst_25 : f32 to vector<8x1xf32>
    %44 = arith.addf %42, %43 : vector<8x1xf32>
    %45 = math.rsqrt %44 : vector<8x1xf32>
    %46 = vector.broadcast %45 : vector<8x1xf32> to vector<8x128xf32>
    %47 = arith.mulf %37, %46 : vector<8x128xf32>
    %48 = vector.broadcast %11 : vector<1x128xf32> to vector<8x128xf32>
    %49 = arith.mulf %47, %48 : vector<8x128xf32>
    %50 = vector.broadcast %12 : vector<1x128xf32> to vector<8x128xf32>
    %51 = arith.addf %49, %50 : vector<8x128xf32>
    %52 = arith.addf %22, %30 : vector<8x128xf32>
    %cst_26 = arith.constant dense<0.000000e+00> : vector<8xf32>
    %53 = vector.multi_reduction <add>, %52, %cst_26 [1] : vector<8x128xf32> to vector<8xf32>
    %54 = vector.shape_cast %53 : vector<8xf32> to vector<8x1xf32>
    %cst_27 = arith.constant 1.280000e+02 : f32
    %55 = vector.broadcast %cst_27 : f32 to vector<8x1xf32>
    %56 = arith.divf %54, %55 : vector<8x1xf32>
    %57 = vector.broadcast %56 : vector<8x1xf32> to vector<8x128xf32>
    %58 = arith.subf %52, %57 : vector<8x128xf32>
    %59 = arith.mulf %58, %58 : vector<8x128xf32>
    %cst_28 = arith.constant dense<0.000000e+00> : vector<8xf32>
    %60 = vector.multi_reduction <add>, %59, %cst_28 [1] : vector<8x128xf32> to vector<8xf32>
    %61 = vector.shape_cast %60 : vector<8xf32> to vector<8x1xf32>
    %cst_29 = arith.constant 1.280000e+02 : f32
    %62 = vector.broadcast %cst_29 : f32 to vector<8x1xf32>
    %63 = arith.divf %61, %62 : vector<8x1xf32>
    %cst_30 = arith.constant 9.99999974E-6 : f32
    %64 = vector.broadcast %cst_30 : f32 to vector<8x1xf32>
    %65 = arith.addf %63, %64 : vector<8x1xf32>
    %66 = math.rsqrt %65 : vector<8x1xf32>
    %67 = vector.broadcast %66 : vector<8x1xf32> to vector<8x128xf32>
    %68 = arith.mulf %58, %67 : vector<8x128xf32>
    %69 = vector.broadcast %11 : vector<1x128xf32> to vector<8x128xf32>
    %70 = arith.mulf %68, %69 : vector<8x128xf32>
    %71 = vector.broadcast %12 : vector<1x128xf32> to vector<8x128xf32>
    %72 = arith.addf %70, %71 : vector<8x128xf32>
    %73 = arith.truncf %51 : vector<8x128xf32> to vector<8x128xbf16>
    %cst_31 = arith.constant dense<0.000000e+00> : vector<8x128xf32>
    %74 = tpu.matmul %73, %4, %cst_31 {dimension_numbers = #tpu.dot_dimension_numbers<[1], [0], [0], [1], [0, 0, 1, 1], [], []>} : vector<8x128xbf16>, vector<128x128xbf16>, vector<8x128xf32> -> vector<8x128xf32>
    %75 = arith.truncf %72 : vector<8x128xf32> to vector<8x128xbf16>
    %cst_32 = arith.constant dense<0.000000e+00> : vector<8x128xf32>
    %76 = tpu.matmul %75, %5, %cst_32 {dimension_numbers = #tpu.dot_dimension_numbers<[1], [0], [0], [1], [0, 0, 1, 1], [], []>} : vector<8x128xbf16>, vector<128x128xbf16>, vector<8x128xf32> -> vector<8x128xf32>
    %77 = arith.addf %74, %76 : vector<8x128xf32>
    %78 = vector.broadcast %10 : vector<1x128xf32> to vector<8x128xf32>
    %79 = arith.addf %77, %78 : vector<8x128xf32>
    %cst_33 = arith.constant dense<0.000000e+00> : vector<8xf32>
    %80 = vector.multi_reduction <add>, %79, %cst_33 [1] : vector<8x128xf32> to vector<8xf32>
    %81 = vector.shape_cast %80 : vector<8xf32> to vector<8x1xf32>
    %cst_34 = arith.constant 1.280000e+02 : f32
    %82 = vector.broadcast %cst_34 : f32 to vector<8x1xf32>
    %83 = arith.divf %81, %82 : vector<8x1xf32>
    %84 = vector.broadcast %83 : vector<8x1xf32> to vector<8x128xf32>
    %85 = arith.subf %79, %84 : vector<8x128xf32>
    %86 = arith.mulf %85, %85 : vector<8x128xf32>
    %cst_35 = arith.constant dense<0.000000e+00> : vector<8xf32>
    %87 = vector.multi_reduction <add>, %86, %cst_35 [1] : vector<8x128xf32> to vector<8xf32>
    %88 = vector.shape_cast %87 : vector<8xf32> to vector<8x1xf32>
    %cst_36 = arith.constant 1.280000e+02 : f32
    %89 = vector.broadcast %cst_36 : f32 to vector<8x1xf32>
    %90 = arith.divf %88, %89 : vector<8x1xf32>
    %cst_37 = arith.constant 9.99999974E-6 : f32
    %91 = vector.broadcast %cst_37 : f32 to vector<8x1xf32>
    %92 = arith.addf %90, %91 : vector<8x1xf32>
    %93 = math.rsqrt %92 : vector<8x1xf32>
    %94 = vector.broadcast %93 : vector<8x1xf32> to vector<8x128xf32>
    %95 = arith.mulf %85, %94 : vector<8x128xf32>
    %96 = vector.broadcast %11 : vector<1x128xf32> to vector<8x128xf32>
    %97 = arith.mulf %95, %96 : vector<8x128xf32>
    %98 = vector.broadcast %12 : vector<1x128xf32> to vector<8x128xf32>
    %99 = arith.addf %97, %98 : vector<8x128xf32>
    %cst_38 = arith.constant 0.000000e+00 : f32
    %100 = vector.broadcast %cst_38 : f32 to vector<8x128xf32>
    %101 = arith.maximumf %99, %100 : vector<8x128xf32>
    %c0_39 = arith.constant 0 : index
    %c0_40 = arith.constant 0 : index
    %102 = vector.load %arg5[%c0_39, %c0_40] : memref<8x128xf32, #tpu.memory_space<vmem>>, vector<8x128xf32>
    tpu.vector_store %arg5[%c0_39, %c0_40], %101 {strides = array<i32>} : memref<8x128xf32, #tpu.memory_space<vmem>>, vector<8x128xf32>,
    return
  }
  func.func @transform_0(%arg0: i32) -> (i32, i32) {
    %c0_i32 = arith.constant 0 : i32
    %c0_i32_0 = arith.constant 0 : i32
    return %arg0, %c0_i32 : i32, i32
  }
  func.func @transform_1(%arg0: i32) -> (i32, i32) {
    %c0_i32 = arith.constant 0 : i32
    %c0_i32_0 = arith.constant 0 : i32
    return %arg0, %c0_i32 : i32, i32
  }
  func.func @transform_2(%arg0: i32) -> (i32, i32) {
    %c0_i32 = arith.constant 0 : i32
    %c0_i32_0 = arith.constant 0 : i32
    %c0_i32_1 = arith.constant 0 : i32
    return %c0_i32, %c0_i32_0 : i32, i32
  }
  func.func @transform_3(%arg0: i32) -> (i32, i32) {
    %c0_i32 = arith.constant 0 : i32
    %c0_i32_0 = arith.constant 0 : i32
    %c0_i32_1 = arith.constant 0 : i32
    return %c0_i32, %c0_i32_0 : i32, i32
  }
  func.func @transform_4(%arg0: i32) -> (i32, i32) {
    %c0_i32 = arith.constant 0 : i32
    %c0_i32_0 = arith.constant 0 : i32
    return %arg0, %c0_i32 : i32, i32
  }
}

</mosaic_0001>

<bundles_post_ra>
// kernel: tpu_custom_call.1
= control target key start
LH: loop header
LB: loop body
LE: loop exit
PB: predicated region body
PF: predicated region fallthrough
CT: control target
= control target key end

     0   :  { %9 = vsyncpa [#allocation3], 0  ;;  %s1280_s0 = inlined_call_operand.hbm [shape: f32[8,128], index: 0, kind: input, shape index: {}]   ;;  %s1281_s1 = inlined_call_operand.hbm [shape: f32[8,64], index: 1, kind: input, shape index: {}]   ;;  %s1282_s2 = inlined_call_operand.hbm [shape: bf16[704,128], index: 2, kind: input, shape index: {}]   ;;  %s1283_s3 = inlined_call_operand.vmem [shape: f32[8,128], index: 3, kind: input, shape index: {}]   ;;  %s1284_s4 = inlined_call_operand.hbm [shape: f32[8,128], index: 4, kind: output, shape index: {}]  }
   0x1   :  { %10 = vsyncpa [#allocation6], 0 }
   0x2   :  { %11 = vsyncpa [#allocation4], 0  ;;  %s1122_s15 = smov [#allocation5]   ;;  %s1123_s17 = smov [#allocation2]  }
   0x3   :  { %s28_s16 = sshll.u32 %s1122_s15, 4  ;;  %s18_s18 = sshll.u32 %s1123_s17, 4  ;;  %s29_s16 = int_to_ptr.vmem [resolvable:$true] %s28_s16  ;;  %s19_s18 = int_to_ptr.vmem [resolvable:$true] %s18_s18 }
   0x4   :  { %s1028_s21 = scalar_lea.hbm %s1281_s1, 128 }
   0x5   :  { %p1029_p0 = scmp.ne.s32.totalorder %s1281_s1, %s1028_s21  ;;  %p1032_p1 = scmp.lt.u32.totalorder %s1028_s21, %s1281_s1 }
   0x7   :  { %p1034_p2 = pnand %p1032_p1, %p1029_p0 }
   0x9   :  { %1037 = shalt.err (!%p1034_p2)
}
   0xa   :  { %s1038_s26 = scalar_lea.vmem %s29_s16, 128  ;;  %p1043_p4 = scmp.lt.s32.totalorder %s29_s16, %s29_s16 }
   0xb   :  { %p1039_p3 = scmp.ne.s32.totalorder %s29_s16, %s1038_s26  ;;  %p1044_p5 = scmp.lt.s32.totalorder %s1038_s26, %s1038_s26 }
   0xd   :  { %p1045_p6 = por %p1044_p5, %p1043_p4 }
   0xf   :  { %p1046_p7 = pnand %p1045_p6, %p1039_p3 }
  0x11   :  { %1049 = shalt.err (!%p1046_p7)
}
  0x12   :  { %31 = dma.hbm_to_vmem [thread:$0]  %s1281_s1, 128, %s29_s16, [#allocation6]  }
  0x13   :  { %s1050_s5 = scalar_lea.hbm %s1280_s0, 128 }
  0x14   :  { %p1051_p8 = scmp.ne.s32.totalorder %s1280_s0, %s1050_s5  ;;  %p1054_p9 = scmp.lt.u32.totalorder %s1050_s5, %s1280_s0 }
  0x16   :  { %p1056_p10 = pnand %p1054_p9, %p1051_p8 }
  0x18   :  { %1059 = shalt.err (!%p1056_p10)
}
  0x19   :  { %s1060_s10 = scalar_lea.vmem %s19_s18, 128  ;;  %p1065_p12 = scmp.lt.s32.totalorder %s19_s18, %s19_s18 }
  0x1a   :  { %p1061_p11 = scmp.ne.s32.totalorder %s19_s18, %s1060_s10  ;;  %p1066_p13 = scmp.lt.s32.totalorder %s1060_s10, %s1060_s10 }
  0x1c   :  { %p1067_p0 = por %p1066_p13, %p1065_p12 }
  0x1e   :  { %p1068_p1 = pnand %p1067_p0, %p1061_p11 }
  0x20   :  { %1071 = shalt.err (!%p1068_p1)
}
  0x21   :  { %21 = dma.hbm_to_vmem [thread:$0]  %s1280_s0, 128, %s19_s18, [#allocation3]  }
  0x22   :  { %s1124_s12 = smov [#allocation7]   ;;  %s1072_s16 = scalar_lea.hbm %s1282_s2, 5632 }
  0x23   :  { %s37_s13 = sshll.u32 %s1124_s12, 4  ;;  %p1073_p2 = scmp.ne.s32.totalorder %s1282_s2, %s1072_s16  ;;  %s38_s13 = int_to_ptr.vmem [resolvable:$true] %s37_s13 }
  0x24   :  { %p1076_p3 = scmp.lt.u32.totalorder %s1072_s16, %s1282_s2 }
  0x26   :  { %p1078_p4 = pnand %p1076_p3, %p1073_p2 }
  0x28   :  { %1081 = shalt.err (!%p1078_p4)
}
  0x29   :  { %s1082_s22 = scalar_lea.vmem %s38_s13, 5632  ;;  %p1087_p6 = scmp.lt.s32.totalorder %s38_s13, %s38_s13 }
  0x2a   :  { %p1083_p5 = scmp.ne.s32.totalorder %s38_s13, %s1082_s22  ;;  %p1088_p7 = scmp.lt.s32.totalorder %s1082_s22, %s1082_s22 }
  0x2c   :  { %p1089_p8 = por %p1088_p7, %p1087_p6 }
  0x2e   :  { %p1090_p9 = pnand %p1089_p8, %p1083_p5 }
  0x30   :  { %1093 = shalt.err (!%p1090_p9)
}
  0x31   :  { %s1125_s0 = smov 64   ;;  %s1126_s18 = smov 4  }
  0x32   :  { %43 = dma.hbm_to_vmem [thread:$0]  %s1282_s2, 5632, %s38_s13, [#allocation6], %s1125_s0, %s1125_s0, %s1126_s18  }
  0x33   :  { %1116 = dma.done.wait [#allocation3], 128  }
  0x34   :  { %1117 = vsyncadd [#allocation3], 4294967168 }
  0x35   :  { %1118 = dma.done.wait [#allocation6], 5760  }
  0x36   :  { %1119 = vsyncadd [#allocation6], 4294961536  ;;  %v1127_v0 = vmov 0.0   ;;  %vm1128_vm0 = vmmov 0   ;;  %v978_v1 = vld [vmem:[#allocation7] sm:$0xff]   ;;  %v980_v3 = vld [vmem:[#allocation7 + $0x8] sm:$0xff]  }
  0x37   :  { %858 = vmatprep.subr.bf16.mxu0 %v1127_v0  ;;  %878 = vmatprep.subr.bf16.mxu1 %v1127_v0  ;;  %v979_v2 = vld [vmem:[#allocation7 + $0x40] sm:$0xff]   ;;  %v981_v4 = vld [vmem:[#allocation7 + $0x48] sm:$0xff]   ;;  %v982_v5 = vld [vmem:[#allocation7 + $0x10] sm:$0xff]   ;;  %vm275_vm1 = vcmask 523264   ;;  %s1129_s11 = smov [#allocation8]  }
  0x38   :  { %886 = vmatprep.mubr.msk.bf16.mxu1 %vm1128_vm0, %v1127_v0  ;;  %874 = vmatprep.mubr.msk.bf16.mxu0 %vm1128_vm0, %v1127_v0  ;;  %v983_v6 = vld [vmem:[#allocation7 + $0x50] sm:$0xff]   ;;  %v984_v7 = vld [vmem:[#allocation7 + $0x18] sm:$0xff]   ;;  %v986_v11 = vld [vmem:[#allocation7 + $0x20] sm:$0xff]  }
  0x39   :  { %859 = vmatpush3.bf16.msra.mxu0 %v978_v1  ;;  %879 = vmatpush3.bf16.msra.mxu1 %v979_v2  ;;  %v985_v8 = vld [vmem:[#allocation7 + $0x58] sm:$0xff]   ;;  %v990_v12 = vld [vmem:[#allocation7 + $0x60] sm:$0xff]   ;;  %v987_v13 = vld [vmem:[#allocation7 + $0x28] sm:$0xff]  }
  0x3a   :  { %860 = vmatprep.subr.bf16.mxu0 %v1127_v0  ;;  %880 = vmatprep.subr.bf16.mxu1 %v1127_v0  ;;  %v153_v9 = vld [vmem:[#allocation5] sm:$0xff]  ;;  %v991_v14 = vld [vmem:[#allocation7 + $0x68] sm:$0xff]   ;;  %v988_v15 = vld [vmem:[#allocation7 + $0x30] sm:$0xff]  }
  0x3b   :  { %v154_v10 = vpack.c.bf16 %v153_v9, %v153_v9  ;;  %v992_v16 = vld [vmem:[#allocation7 + $0x70] sm:$0xff]   ;;  %v989_v17 = vld [vmem:[#allocation7 + $0x38] sm:$0xff]   ;;  %v995_v20 = vld [vmem:[#allocation7 + $0xa0] sm:$0xff]  }
  0x3c   :  { %v151_v18 = vld [vmem:[#allocation2] sm:$0xff]  ;;  %v993_v19 = vld [vmem:[#allocation7 + $0x78] sm:$0xff]   ;;  %v994_v22 = vld [vmem:[#allocation7 + $0x80] sm:$0xff]  }
  0x3d   :  { %861 = vmatpush3.bf16.msra.mxu0 %v980_v3  ;;  %881 = vmatpush3.bf16.msra.mxu1 %v981_v4  ;;  %v152_v21 = vpack.c.bf16 %v151_v18, %v151_v18  ;;  %v997_v23 = vld [vmem:[#allocation7 + $0xa8] sm:$0xff]   ;;  %v999_v25 = vld [vmem:[#allocation7 + $0xb0] sm:$0xff]   ;;  %v1000_v27 = vld [vmem:[#allocation7 + $0x98] sm:$0xff]  }
  0x3e   :  { %862 = vmatprep.subr.bf16.mxu0 %v1127_v0  ;;  %882 = vmatprep.subr.bf16.mxu1 %v1127_v0  ;;  %v996_v24 = vld [vmem:[#allocation7 + $0x88] sm:$0xff]   ;;  %v998_v26 = vld [vmem:[#allocation7 + $0x90] sm:$0xff]   ;;  %v1001_v28 = vld [vmem:[#allocation7 + $0xb8] sm:$0xff]  }
  0x3f   :  { %v1002_v29 = vld [vmem:[#allocation7 + $0xc0] sm:$0xff]   ;;  %v1003_v30 = vld [vmem:[#allocation7 + $0xc8] sm:$0xff]   ;;  %v1004_v31 = vld [vmem:[#allocation7 + $0xd0] sm:$0xff]  }
  0x40   :  { %v1005_v32 = vld [vmem:[#allocation7 + $0xd8] sm:$0xff]   ;;  %v765_v33 = vld [vmem:[%s1283_s3 + $0x1] ss:$0 sm:$0xff]  ;;  %v756_v40 = vld [vmem:[%s1283_s3] ss:$0 sm:$0xff] }
  0x41   :  { %863 = vmatpush3.bf16.msra.mxu0 %v982_v5  ;;  %883 = vmatpush3.bf16.msra.mxu1 %v983_v6  ;;  %v771_v47 = vld [vmem:[%s1283_s3 + $0x2] ss:$0 sm:$0xff]  ;;  %v780_v54 = vld [vmem:[%s1283_s3 + $0x3] ss:$0 sm:$0xff]  ;;  %v1006_v61 = vld [vmem:[#allocation7 + $0xe0] sm:$0xff]  }
  0x42   :  { %864 = vmatprep.subr.bf16.mxu0 %v1127_v0  ;;  %884 = vmatprep.subr.bf16.mxu1 %v1127_v0  ;;  %v1007_v62 = vld [vmem:[#allocation7 + $0xe8] sm:$0xff]   ;;  %v1009_v9 = vld [vmem:[#allocation7 + $0xf8] sm:$0xff]   ;;  %v1018_v18 = vld [vmem:[#allocation7 + $0x140] sm:$0xff]  }
  0x45   :  { %865 = vmatpush3.bf16.msra.mxu0 %v984_v7  ;;  %885 = vmatpush3.bf16.msra.mxu1 %v985_v8  ;;  %v1008_v7 = vld [vmem:[#allocation7 + $0xf0] sm:$0xff]  }
  0x46   :  { %866 = vmatprep.subr.bf16.mxu0 %v1127_v0  ;;  %890 = vmatprep.subr.bf16.mxu1 %v1127_v0 }
  0x48   :  { %887 = vmatmul.mubr.msk.bf16.vlgmr.msra.gmra.mrb[0].mxu1 %vm275_vm1, %v154_v10  ;;  %v1010_v10 = vld [vmem:[#allocation7 + $0x120] sm:$0xff]  }
  0x49   :  { %867 = vmatpush3.bf16.msra.mxu0 %v986_v11  ;;  %891 = vmatpush3.bf16.msra.mxu1 %v990_v12  ;;  %v1011_v11 = vld [vmem:[#allocation7 + $0x100] sm:$0xff]   ;;  %v1012_v12 = vld [vmem:[#allocation7 + $0x128] sm:$0xff]  }
  0x4a   :  { %868 = vmatprep.subr.bf16.mxu0 %v1127_v0  ;;  %892 = vmatprep.subr.bf16.mxu1 %v1127_v0 }
  0x4b   :  { %906 = vmatprep.mubr.msk.bf16.mxu1 %vm1128_vm0, %v1127_v0 }
  0x4d   :  { %869 = vmatpush3.bf16.msra.mxu0 %v987_v13  ;;  %893 = vmatpush3.bf16.msra.mxu1 %v991_v14  ;;  %v1013_v13 = vld [vmem:[#allocation7 + $0x108] sm:$0xff]   ;;  %v1014_v14 = vld [vmem:[#allocation7 + $0x130] sm:$0xff]  }
  0x4e   :  { %870 = vmatprep.subr.bf16.mxu0 %v1127_v0  ;;  %894 = vmatprep.subr.bf16.mxu1 %v1127_v0 }
  0x51   :  { %871 = vmatpush3.bf16.msra.mxu0 %v988_v15  ;;  %895 = vmatpush3.bf16.msra.mxu1 %v992_v16  ;;  %v1015_v15 = vld [vmem:[#allocation7 + $0x110] sm:$0xff]   ;;  %v1016_v16 = vld [vmem:[#allocation7 + $0x138] sm:$0xff]  }
  0x52   :  { %872 = vmatprep.subr.bf16.mxu0 %v1127_v0  ;;  %896 = vmatprep.subr.bf16.mxu1 %v1127_v0 }
  0x55   :  { %873 = vmatpush3.bf16.msra.mxu0 %v989_v17  ;;  %897 = vmatpush3.bf16.msra.mxu1 %v993_v19  ;;  %v1017_v17 = vld [vmem:[#allocation7 + $0x118] sm:$0xff]   ;;  %v1019_v19 = vld [vmem:[#allocation7 + $0x148] sm:$0xff]  }
  0x56   :  { %910 = vmatprep.subr.bf16.mxu0 %v1127_v0  ;;  %898 = vmatprep.subr.bf16.mxu1 %v1127_v0 }
  0x58   :  { %875 = vmatmul.mubr.bf16.vlgmr.msra.gmra.mrb[0].mxu0 %v152_v21  ;;  %v1021_v21 = vld [vmem:[#allocation7 + $0x158] sm:$0xff]  }
  0x59   :  { %911 = vmatpush3.bf16.msra.mxu0 %v995_v20  ;;  %926 = vmatprep.mubr.msk.bf16.mxu0 %vm1128_vm0, %v1127_v0  ;;  %v1020_v20 = vld [vmem:[#allocation7 + $0x150] sm:$0xff]  }
  0x5a   :  { %899 = vmatpush3.bf16.msra.mxu1 %v994_v22  ;;  %912 = vmatprep.subr.bf16.mxu0 %v1127_v0 }
  0x5b   :  { %900 = vmatprep.subr.bf16.mxu1 %v1127_v0 }
  0x5d   :  { %913 = vmatpush3.bf16.msra.mxu0 %v997_v23 }
  0x5e   :  { %901 = vmatpush3.bf16.msra.mxu1 %v996_v24  ;;  %914 = vmatprep.subr.bf16.mxu0 %v1127_v0 }
  0x5f   :  { %902 = vmatprep.subr.bf16.mxu1 %v1127_v0 }
  0x61   :  { %915 = vmatpush3.bf16.msra.mxu0 %v999_v25 }
  0x62   :  { %903 = vmatpush3.bf16.msra.mxu1 %v998_v26  ;;  %916 = vmatprep.subr.bf16.mxu0 %v1127_v0 }
  0x63   :  { %904 = vmatprep.subr.bf16.mxu1 %v1127_v0 }
  0x65   :  { %917 = vmatpush3.bf16.msra.mxu0 %v1001_v28 }
  0x66   :  { %905 = vmatpush3.bf16.msra.mxu1 %v1000_v27  ;;  %918 = vmatprep.subr.bf16.mxu0 %v1127_v0  ;;  %v789_v27 = vld [vmem:[%s1283_s3 + $0x5] ss:$0 sm:$0xff] }
  0x67   :  { %930 = vmatprep.subr.bf16.mxu1 %v1127_v0 }
  0x69   :  { %919 = vmatpush3.bf16.msra.mxu0 %v1002_v29 }
  0x6a   :  { %920 = vmatprep.subr.bf16.mxu0 %v1127_v0 }
  0x6d   :  { %921 = vmatpush3.bf16.msra.mxu0 %v1003_v30  ;;  %v790_v30 = vld [vmem:[%s1283_s3 + $0x6] ss:$0 sm:$0xff] }
  0x6e   :  { %922 = vmatprep.subr.bf16.mxu0 %v1127_v0 }
  0x71   :  { %923 = vmatpush3.bf16.msra.mxu0 %v1004_v31 }
  0x72   :  { %924 = vmatprep.subr.bf16.mxu0 %v1127_v0 }
  0x75   :  { %925 = vmatpush3.bf16.msra.mxu0 %v1005_v32 }
  0x76   :  { %950 = vmatprep.subr.bf16.mxu0 %v1127_v0 }
 0x11b   :  { %v313_v34 = vpop.f32.mrb[0].mxu1 }
 0x11c   :  { %v314_v35 = vadd.f32 %v765_v33, %v313_v34  ;;  %v888_v36 = vpop.f32.mrb[1].mxu1 }
 0x11d   :  { %v316_v37 = vpop.f32.mrb[2].mxu1 }
 0x11e   :  { %v319_v38 = vpack.c.bf16 %v314_v35, %v314_v35  ;;  %v889_v39 = vpop.f32.mrb[3].mxu1 }
 0x120   :  { %907 = vmatmul.mubr.bf16.vlgmr.msra.gmra.mrb[4].mxu1 %v319_v38 }
 0x121   :  { %946 = vmatprep.mubr.msk.bf16.mxu1 %vm1128_vm0, %v1127_v0  ;;  %931 = vmatpush3.bf16.msra.mxu1 %v1010_v10 }
 0x122   :  { %932 = vmatprep.subr.bf16.mxu1 %v1127_v0 }
 0x125   :  { %933 = vmatpush3.bf16.msra.mxu1 %v1012_v12 }
 0x126   :  { %934 = vmatprep.subr.bf16.mxu1 %v1127_v0 }
 0x129   :  { %935 = vmatpush3.bf16.msra.mxu1 %v1014_v14 }
 0x12a   :  { %936 = vmatprep.subr.bf16.mxu1 %v1127_v0 }
 0x12b   :  { %v241_v41 = vpop.f32.mrb[0].mxu0 }
 0x12c   :  { %v242_v42 = vadd.f32 %v756_v40, %v241_v41  ;;  %v876_v43 = vpop.f32.mrb[1].mxu0 }
 0x12d   :  { %v244_v44 = vpop.f32.mrb[2].mxu0  ;;  %937 = vmatpush3.bf16.msra.mxu1 %v1016_v16 }
 0x12e   :  { %v412_v45 = vpack.c.bf16 %v242_v42, %v242_v42  ;;  %v877_v46 = vpop.f32.mrb[3].mxu0  ;;  %938 = vmatprep.subr.bf16.mxu1 %v1127_v0  ;;  %v807_v44 = vld [vmem:[%s1283_s3 + $0x4] ss:$0 sm:$0xff]  ;;  %s746_s3 = sshll.u32 %s1129_s11, 4  ;;  %s747_s3 = int_to_ptr.vmem [resolvable:$true] %s746_s3 }
 0x12f   :  { %s1094_s12 = scalar_lea.vmem %s747_s3, 128  ;;  %p1099_p11 = scmp.lt.s32.totalorder %s747_s3, %s747_s3 }
 0x130   :  { %927 = vmatmul.mubr.bf16.vlgmr.msra.gmra.mrb[4].mxu0 %v412_v45  ;;  %p1095_p10 = scmp.ne.s32.totalorder %s747_s3, %s1094_s12  ;;  %p1100_p12 = scmp.lt.s32.totalorder %s1094_s12, %s1094_s12 }
 0x131   :  { %966 = vmatprep.mubr.msk.bf16.mxu0 %vm1128_vm0, %v1127_v0  ;;  %951 = vmatpush3.bf16.msra.mxu0 %v1006_v61 }
 0x132   :  { %952 = vmatprep.subr.bf16.mxu0 %v1127_v0  ;;  %939 = vmatpush3.bf16.msra.mxu1 %v1018_v18  ;;  %p1101_p13 = por %p1100_p12, %p1099_p11 }
 0x133   :  { %940 = vmatprep.subr.bf16.mxu1 %v1127_v0 }
 0x134   :  { %p1102_p0 = pnand %p1101_p13, %p1095_p10 }
 0x135   :  { %953 = vmatpush3.bf16.msra.mxu0 %v1007_v62 }
 0x136   :  { %954 = vmatprep.subr.bf16.mxu0 %v1127_v0  ;;  %941 = vmatpush3.bf16.msra.mxu1 %v1019_v19 }
 0x137   :  { %942 = vmatprep.subr.bf16.mxu1 %v1127_v0 }
 0x139   :  { %955 = vmatpush3.bf16.msra.mxu0 %v1008_v7 }
 0x13a   :  { %956 = vmatprep.subr.bf16.mxu0 %v1127_v0  ;;  %943 = vmatpush3.bf16.msra.mxu1 %v1020_v20 }
 0x13b   :  { %944 = vmatprep.subr.bf16.mxu1 %v1127_v0 }
 0x13d   :  { %957 = vmatpush3.bf16.msra.mxu0 %v1009_v9 }
 0x13e   :  { %958 = vmatprep.subr.bf16.mxu0 %v1127_v0  ;;  %945 = vmatpush3.bf16.msra.mxu1 %v1021_v21 }
 0x141   :  { %959 = vmatpush3.bf16.msra.mxu0 %v1011_v11 }
 0x142   :  { %960 = vmatprep.subr.bf16.mxu0 %v1127_v0 }
 0x145   :  { %961 = vmatpush3.bf16.msra.mxu0 %v1013_v13 }
 0x146   :  { %962 = vmatprep.subr.bf16.mxu0 %v1127_v0 }
 0x149   :  { %963 = vmatpush3.bf16.msra.mxu0 %v1015_v15 }
 0x14a   :  { %964 = vmatprep.subr.bf16.mxu0 %v1127_v0 }
 0x14d   :  { %965 = vmatpush3.bf16.msra.mxu0 %v1017_v17 }
 0x1f3   :  { %v406_v48 = vpop.f32.mrb[4].mxu1 }
 0x1f4   :  { %v407_v49 = vadd.f32 %v771_v47, %v406_v48  ;;  %v908_v50 = vpop.f32.mrb[5].mxu1 }
 0x1f5   :  { %v409_v51 = vpop.f32.mrb[6].mxu1 }
 0x1f6   :  { %v505_v52 = vadd.f32 %v407_v49, %v242_v42  ;;  %v909_v53 = vpop.f32.mrb[7].mxu1 }
 0x1f8   :  { %506 = vadd.xlane.f32.xlu0 %v505_v52 }
 0x203   :  { %v499_v55 = vpop.f32.mrb[4].mxu0 }
 0x204   :  { %v500_v56 = vadd.f32 %v780_v54, %v499_v55  ;;  %v928_v57 = vpop.f32.mrb[5].mxu0 }
 0x205   :  { %v502_v58 = vpop.f32.mrb[6].mxu0 }
 0x206   :  { %v929_v59 = vpop.f32.mrb[7].mxu0  ;;  %v528_v60 = vadd.f32 %v500_v56, %v314_v35 }
 0x208   :  { %529 = vadd.xlane.f32.xlu0 %v528_v60 }
 0x285   :  { %v507_v63 = vpop.xlane.xlu0 %506 }
 0x286   :  { %v509_v1 = vmul.f32 0.0078125, %v507_v63 }
 0x288   :  { %v510_v2 = vsub.f32 %v505_v52, %v509_v1 }
 0x28a   :  { %v511_v3 = vmul.f32 %v510_v2, %v510_v2 }
 0x28c   :  { %512 = vadd.xlane.f32.xlu1 %v511_v3 }
 0x295   :  { %v530_v4 = vpop.xlane.xlu0 %529 }
 0x296   :  { %v531_v5 = vmul.f32 0.0078125, %v530_v4 }
 0x298   :  { %v532_v6 = vsub.f32 %v528_v60, %v531_v5 }
 0x29a   :  { %v533_v8 = vmul.f32 %v532_v6, %v532_v6 }
 0x29c   :  { %534 = vadd.xlane.f32.xlu1 %v533_v8 }
 0x319   :  { %v513_v22 = vpop.xlane.xlu1 %512 }
 0x31a   :  { %v514_v23 = vmul.f32 0.0078125, %v513_v22 }
 0x31c   :  { %v515_v24 = vadd.f32 1e-05, %v514_v23 }
 0x31e   :  { %1022 = vrsqrt.f32 %v515_v24 }
 0x328   :  { %v1023_v25 = vpop.eup %1022 }
 0x329   :  { %v535_v26 = vpop.xlane.xlu1 %534  ;;  %v517_v29 = vmul.f32 %v1023_v25, %v510_v2 }
 0x32a   :  { %v536_v28 = vmul.f32 0.0078125, %v535_v26 }
 0x32b   :  { %v522_v32 = vmul.f32 %v789_v27, %v517_v29 }
 0x32c   :  { %v537_v31 = vadd.f32 1e-05, %v536_v28 }
 0x32d   :  { %v527_v0 = vadd.f32 %v790_v30, %v522_v32 }
 0x32e   :  { %1024 = vrsqrt.f32 %v537_v31 }
 0x32f   :  { %v542_v33 = vpack.c.bf16 %v527_v0, %v527_v0 }
 0x331   :  { %967 = vmatmul.mubr.bf16.vlgmr.msra.gmra.mrb[8].mxu0 %v542_v33 }
 0x338   :  { %v1025_v34 = vpop.eup %1024 }
 0x339   :  { %v539_v35 = vmul.f32 %v1025_v34, %v532_v6 }
 0x33b   :  { %v540_v36 = vmul.f32 %v789_v27, %v539_v35 }
 0x33d   :  { %v541_v37 = vadd.f32 %v790_v30, %v540_v36 }
 0x33f   :  { %v543_v38 = vpack.c.bf16 %v541_v37, %v541_v37 }
 0x341   :  { %947 = vmatmul.mubr.bf16.vlgmr.msra.gmra.mrb[8].mxu1 %v543_v38 }
 0x404   :  { %v714_v39 = vpop.f32.mrb[8].mxu0 }
 0x405   :  { %v968_v40 = vpop.f32.mrb[9].mxu0 }
 0x406   :  { %v717_v41 = vpop.f32.mrb[10].mxu0 }
 0x407   :  { %v969_v42 = vpop.f32.mrb[11].mxu0 }
 0x414   :  { %v626_v43 = vpop.f32.mrb[8].mxu1 }
 0x415   :  { %v715_v45 = vadd.f32 %v714_v39, %v626_v43  ;;  %v948_v46 = vpop.f32.mrb[9].mxu1 }
 0x416   :  { %v629_v47 = vpop.f32.mrb[10].mxu1 }
 0x417   :  { %v949_v48 = vpop.f32.mrb[11].mxu1  ;;  %v724_v49 = vadd.f32 %v807_v44, %v715_v45 }
 0x419   :  { %725 = vadd.xlane.f32.xlu0 %v724_v49 }
 0x4a6   :  { %v726_v50 = vpop.xlane.xlu0 %725 }
 0x4a7   :  { %v727_v51 = vmul.f32 0.0078125, %v726_v50 }
 0x4a9   :  { %v728_v52 = vsub.f32 %v724_v49, %v727_v51 }
 0x4ab   :  { %v729_v53 = vmul.f32 %v728_v52, %v728_v52 }
 0x4ad   :  { %730 = vadd.xlane.f32.xlu1 %v729_v53 }
 0x53a   :  { %v731_v54 = vpop.xlane.xlu1 %730 }
 0x53b   :  { %v732_v55 = vmul.f32 0.0078125, %v731_v54 }
 0x53d   :  { %v733_v56 = vadd.f32 1e-05, %v732_v55 }
 0x53f   :  { %1026 = vrsqrt.f32 %v733_v56 }
 0x549   :  { %v1027_v57 = vpop.eup %1026 }
 0x54a   :  { %v735_v58 = vmul.f32 %v1027_v57, %v728_v52 }
 0x54c   :  { %v736_v59 = vmul.f32 %v789_v27, %v735_v58 }
 0x54e   :  { %v737_v60 = vadd.f32 %v790_v30, %v736_v59 }
 0x550   :  { %v738_v61 = vmax.f32 %v737_v60, 0.0 }
 0x552   :  { %739 = vst [vmem:[#allocation8] sm:$0xff] %v738_v61 }
 0x553   :  { %1105 = shalt.err (!%p1102_p0)
}
 0x554   :  { %s1106_s15 = scalar_lea.hbm %s1284_s4, 128 }
 0x555   :  { %p1107_p1 = scmp.ne.s32.totalorder %s1284_s4, %s1106_s15  ;;  %p1110_p2 = scmp.lt.u32.totalorder %s1106_s15, %s1284_s4 }
 0x557   :  { %p1112_p3 = pnand %p1110_p2, %p1107_p1 }
 0x559   :  { %1115 = shalt.err (!%p1112_p3)
}
 0x55a   :  { %749 = dma.vmem_to_hbm [thread:$0]  %s747_s3, 128, %s1284_s4, [#allocation4]  }
 0x55b   :  { %1120 = dma.done.wait [#allocation4], 128  }
 0x55c   :  { %1121 = vsyncadd [#allocation4], 4294967168 }
 0x55d   :  { %753 = vsyncpa [#allocation3], 1 }
 0x55e   :  { %754 = vsyncpa [#allocation6], 1 }
 0x55f   :  { %755 = vsyncpa [#allocation4], 1 }

// kernel: tpu_custom_call.1
= control target key start
LH: loop header
LB: loop body
LE: loop exit
PB: predicated region body
PF: predicated region fallthrough
CT: control target
= control target key end

     0   :  { %9 = vsyncpa [#allocation3], 0  ;;  %s1280_s0 = inlined_call_operand.hbm [shape: f32[8,128], index: 0, kind: input, shape index: {}]   ;;  %s1281_s1 = inlined_call_operand.hbm [shape: f32[8,64], index: 1, kind: input, shape index: {}]   ;;  %s1282_s2 = inlined_call_operand.hbm [shape: bf16[704,128], index: 2, kind: input, shape index: {}]   ;;  %s1283_s3 = inlined_call_operand.vmem [shape: f32[8,128], index: 3, kind: input, shape index: {}]   ;;  %s1284_s4 = inlined_call_operand.hbm [shape: f32[8,128], index: 4, kind: output, shape index: {}]  }
   0x1   :  { %10 = vsyncpa [#allocation6], 0 }
   0x2   :  { %11 = vsyncpa [#allocation4], 0  ;;  %s1122_s15 = smov [#allocation5]   ;;  %s1123_s17 = smov [#allocation2]  }
   0x3   :  { %s28_s16 = sshll.u32 %s1122_s15, 4  ;;  %s18_s18 = sshll.u32 %s1123_s17, 4  ;;  %s29_s16 = int_to_ptr.vmem [resolvable:$true] %s28_s16  ;;  %s19_s18 = int_to_ptr.vmem [resolvable:$true] %s18_s18 }
   0x4   :  { %s1028_s21 = scalar_lea.hbm %s1281_s1, 128 }
   0x5   :  { %p1029_p0 = scmp.ne.s32.totalorder %s1281_s1, %s1028_s21  ;;  %p1032_p1 = scmp.lt.u32.totalorder %s1028_s21, %s1281_s1 }
   0x7   :  { %p1034_p2 = pnand %p1032_p1, %p1029_p0 }
   0x9   :  { %1037 = shalt.err (!%p1034_p2)
}
   0xa   :  { %s1038_s26 = scalar_lea.vmem %s29_s16, 128  ;;  %p1043_p4 = scmp.lt.s32.totalorder %s29_s16, %s29_s16 }
   0xb   :  { %p1039_p3 = scmp.ne.s32.totalorder %s29_s16, %s1038_s26  ;;  %p1044_p5 = scmp.lt.s32.totalorder %s1038_s26, %s1038_s26 }
   0xd   :  { %p1045_p6 = por %p1044_p5, %p1043_p4 }
   0xf   :  { %p1046_p7 = pnand %p1045_p6, %p1039_p3 }
  0x11   :  { %1049 = shalt.err (!%p1046_p7)
}
  0x12   :  { %31 = dma.hbm_to_vmem [thread:$0]  %s1281_s1, 128, %s29_s16, [#allocation6]  }
  0x13   :  { %s1050_s5 = scalar_lea.hbm %s1280_s0, 128 }
  0x14   :  { %p1051_p8 = scmp.ne.s32.totalorder %s1280_s0, %s1050_s5  ;;  %p1054_p9 = scmp.lt.u32.totalorder %s1050_s5, %s1280_s0 }
  0x16   :  { %p1056_p10 = pnand %p1054_p9, %p1051_p8 }
  0x18   :  { %1059 = shalt.err (!%p1056_p10)
}
  0x19   :  { %s1060_s10 = scalar_lea.vmem %s19_s18, 128  ;;  %p1065_p12 = scmp.lt.s32.totalorder %s19_s18, %s19_s18 }
  0x1a   :  { %p1061_p11 = scmp.ne.s32.totalorder %s19_s18, %s1060_s10  ;;  %p1066_p13 = scmp.lt.s32.totalorder %s1060_s10, %s1060_s10 }
  0x1c   :  { %p1067_p0 = por %p1066_p13, %p1065_p12 }
  0x1e   :  { %p1068_p1 = pnand %p1067_p0, %p1061_p11 }
  0x20   :  { %1071 = shalt.err (!%p1068_p1)
}
  0x21   :  { %21 = dma.hbm_to_vmem [thread:$0]  %s1280_s0, 128, %s19_s18, [#allocation3]  }
  0x22   :  { %s1124_s12 = smov [#allocation7]   ;;  %s1072_s16 = scalar_lea.hbm %s1282_s2, 5632 }
  0x23   :  { %s37_s13 = sshll.u32 %s1124_s12, 4  ;;  %p1073_p2 = scmp.ne.s32.totalorder %s1282_s2, %s1072_s16  ;;  %s38_s13 = int_to_ptr.vmem [resolvable:$true] %s37_s13 }
  0x24   :  { %p1076_p3 = scmp.lt.u32.totalorder %s1072_s16, %s1282_s2 }
  0x26   :  { %p1078_p4 = pnand %p1076_p3, %p1073_p2 }
  0x28   :  { %1081 = shalt.err (!%p1078_p4)
}
  0x29   :  { %s1082_s22 = scalar_lea.vmem %s38_s13, 5632  ;;  %p1087_p6 = scmp.lt.s32.totalorder %s38_s13, %s38_s13 }
  0x2a   :  { %p1083_p5 = scmp.ne.s32.totalorder %s38_s13, %s1082_s22  ;;  %p1088_p7 = scmp.lt.s32.totalorder %s1082_s22, %s1082_s22 }
  0x2c   :  { %p1089_p8 = por %p1088_p7, %p1087_p6 }
  0x2e   :  { %p1090_p9 = pnand %p1089_p8, %p1083_p5 }
  0x30   :  { %1093 = shalt.err (!%p1090_p9)
}
  0x31   :  { %s1125_s0 = smov 64   ;;  %s1126_s18 = smov 4  }
  0x32   :  { %43 = dma.hbm_to_vmem [thread:$0]  %s1282_s2, 5632, %s38_s13, [#allocation6], %s1125_s0, %s1125_s0, %s1126_s18  }
  0x33   :  { %1116 = dma.done.wait [#allocation3], 128  }
  0x34   :  { %1117 = vsyncadd [#allocation3], 4294967168 }
  0x35   :  { %1118 = dma.done.wait [#allocation6], 5760  }
  0x36   :  { %1119 = vsyncadd [#allocation6], 4294961536  ;;  %v1127_v0 = vmov 0.0   ;;  %vm1128_vm0 = vmmov 0   ;;  %v978_v1 = vld [vmem:[#allocation7] sm:$0xff]   ;;  %v980_v3 = vld [vmem:[#allocation7 + $0x8] sm:$0xff]  }
  0x37   :  { %858 = vmatprep.subr.bf16.mxu0 %v1127_v0  ;;  %878 = vmatprep.subr.bf16.mxu1 %v1127_v0  ;;  %v979_v2 = vld [vmem:[#allocation7 + $0x40] sm:$0xff]   ;;  %v981_v4 = vld [vmem:[#allocation7 + $0x48] sm:$0xff]   ;;  %v982_v5 = vld [vmem:[#allocation7 + $0x10] sm:$0xff]   ;;  %vm275_vm1 = vcmask 523264   ;;  %s1129_s11 = smov [#allocation8]  }
  0x38   :  { %886 = vmatprep.mubr.msk.bf16.mxu1 %vm1128_vm0, %v1127_v0  ;;  %874 = vmatprep.mubr.msk.bf16.mxu0 %vm1128_vm0, %v1127_v0  ;;  %v983_v6 = vld [vmem:[#allocation7 + $0x50] sm:$0xff]   ;;  %v984_v7 = vld [vmem:[#allocation7 + $0x18] sm:$0xff]   ;;  %v986_v11 = vld [vmem:[#allocation7 + $0x20] sm:$0xff]  }
  0x39   :  { %859 = vmatpush3.bf16.msra.mxu0 %v978_v1  ;;  %879 = vmatpush3.bf16.msra.mxu1 %v979_v2  ;;  %v985_v8 = vld [vmem:[#allocation7 + $0x58] sm:$0xff]   ;;  %v990_v12 = vld [vmem:[#allocation7 + $0x60] sm:$0xff]   ;;  %v987_v13 = vld [vmem:[#allocation7 + $0x28] sm:$0xff]  }
  0x3a   :  { %860 = vmatprep.subr.bf16.mxu0 %v1127_v0  ;;  %880 = vmatprep.subr.bf16.mxu1 %v1127_v0  ;;  %v153_v9 = vld [vmem:[#allocation5] sm:$0xff]  ;;  %v991_v14 = vld [vmem:[#allocation7 + $0x68] sm:$0xff]   ;;  %v988_v15 = vld [vmem:[#allocation7 + $0x30] sm:$0xff]  }
  0x3b   :  { %v154_v10 = vpack.c.bf16 %v153_v9, %v153_v9  ;;  %v992_v16 = vld [vmem:[#allocation7 + $0x70] sm:$0xff]   ;;  %v989_v17 = vld [vmem:[#allocation7 + $0x38] sm:$0xff]   ;;  %v995_v20 = vld [vmem:[#allocation7 + $0xa0] sm:$0xff]  }
  0x3c   :  { %v151_v18 = vld [vmem:[#allocation2] sm:$0xff]  ;;  %v993_v19 = vld [vmem:[#allocation7 + $0x78] sm:$0xff]   ;;  %v994_v22 = vld [vmem:[#allocation7 + $0x80] sm:$0xff]  }
  0x3d   :  { %861 = vmatpush3.bf16.msra.mxu0 %v980_v3  ;;  %881 = vmatpush3.bf16.msra.mxu1 %v981_v4  ;;  %v152_v21 = vpack.c.bf16 %v151_v18, %v151_v18  ;;  %v997_v23 = vld [vmem:[#allocation7 + $0xa8] sm:$0xff]   ;;  %v999_v25 = vld [vmem:[#allocation7 + $0xb0] sm:$0xff]   ;;  %v1000_v27 = vld [vmem:[#allocation7 + $0x98] sm:$0xff]  }
  0x3e   :  { %862 = vmatprep.subr.bf16.mxu0 %v1127_v0  ;;  %882 = vmatprep.subr.bf16.mxu1 %v1127_v0  ;;  %v996_v24 = vld [vmem:[#allocation7 + $0x88] sm:$0xff]   ;;  %v998_v26 = vld [vmem:[#allocation7 + $0x90] sm:$0xff]   ;;  %v1001_v28 = vld [vmem:[#allocation7 + $0xb8] sm:$0xff]  }
  0x3f   :  { %v1002_v29 = vld [vmem:[#allocation7 + $0xc0] sm:$0xff]   ;;  %v1003_v30 = vld [vmem:[#allocation7 + $0xc8] sm:$0xff]   ;;  %v1004_v31 = vld [vmem:[#allocation7 + $0xd0] sm:$0xff]  }
  0x40   :  { %v1005_v32 = vld [vmem:[#allocation7 + $0xd8] sm:$0xff]   ;;  %v765_v33 = vld [vmem:[%s1283_s3 + $0x1] ss:$0 sm:$0xff]  ;;  %v756_v40 = vld [vmem:[%s1283_s3] ss:$0 sm:$0xff] }
  0x41   :  { %863 = vmatpush3.bf16.msra.mxu0 %v982_v5  ;;  %883 = vmatpush3.bf16.msra.mxu1 %v983_v6  ;;  %v771_v47 = vld [vmem:[%s1283_s3 + $0x2] ss:$0 sm:$0xff]  ;;  %v780_v54 = vld [vmem:[%s1283_s3 + $0x3] ss:$0 sm:$0xff]  ;;  %v1006_v61 = vld [vmem:[#allocation7 + $0xe0] sm:$0xff]  }
  0x42   :  { %864 = vmatprep.subr.bf16.mxu0 %v1127_v0  ;;  %884 = vmatprep.subr.bf16.mxu1 %v1127_v0  ;;  %v1007_v62 = vld [vmem:[#allocation7 + $0xe8] sm:$0xff]   ;;  %v1009_v9 = vld [vmem:[#allocation7 + $0xf8] sm:$0xff]   ;;  %v1018_v18 = vld [vmem:[#allocation7 + $0x140] sm:$0xff]  }
  0x45   :  { %865 = vmatpush3.bf16.msra.mxu0 %v984_v7  ;;  %885 = vmatpush3.bf16.msra.mxu1 %v985_v8  ;;  %v1008_v7 = vld [vmem:[#allocation7 + $0xf0] sm:$0xff]  }
  0x46   :  { %866 = vmatprep.subr.bf16.mxu0 %v1127_v0  ;;  %890 = vmatprep.subr.bf16.mxu1 %v1127_v0 }
  0x48   :  { %887 = vmatmul.mubr.msk.bf16.vlgmr.msra.gmra.mrb[0].mxu1 %vm275_vm1, %v154_v10  ;;  %v1010_v10 = vld [vmem:[#allocation7 + $0x120] sm:$0xff]  }
  0x49   :  { %867 = vmatpush3.bf16.msra.mxu0 %v986_v11  ;;  %891 = vmatpush3.bf16.msra.mxu1 %v990_v12  ;;  %v1011_v11 = vld [vmem:[#allocation7 + $0x100] sm:$0xff]   ;;  %v1012_v12 = vld [vmem:[#allocation7 + $0x128] sm:$0xff]  }
  0x4a   :  { %868 = vmatprep.subr.bf16.mxu0 %v1127_v0  ;;  %892 = vmatprep.subr.bf16.mxu1 %v1127_v0 }
  0x4b   :  { %906 = vmatprep.mubr.msk.bf16.mxu1 %vm1128_vm0, %v1127_v0 }
  0x4d   :  { %869 = vmatpush3.bf16.msra.mxu0 %v987_v13  ;;  %893 = vmatpush3.bf16.msra.mxu1 %v991_v14  ;;  %v1013_v13 = vld [vmem:[#allocation7 + $0x108] sm:$0xff]   ;;  %v1014_v14 = vld [vmem:[#allocation7 + $0x130] sm:$0xff]  }
  0x4e   :  { %870 = vmatprep.subr.bf16.mxu0 %v1127_v0  ;;  %894 = vmatprep.subr.bf16.mxu1 %v1127_v0 }
  0x51   :  { %871 = vmatpush3.bf16.msra.mxu0 %v988_v15  ;;  %895 = vmatpush3.bf16.msra.mxu1 %v992_v16  ;;  %v1015_v15 = vld [vmem:[#allocation7 + $0x110] sm:$0xff]   ;;  %v1016_v16 = vld [vmem:[#allocation7 + $0x138] sm:$0xff]  }
  0x52   :  { %872 = vmatprep.subr.bf16.mxu0 %v1127_v0  ;;  %896 = vmatprep.subr.bf16.mxu1 %v1127_v0 }
  0x55   :  { %873 = vmatpush3.bf16.msra.mxu0 %v989_v17  ;;  %897 = vmatpush3.bf16.msra.mxu1 %v993_v19  ;;  %v1017_v17 = vld [vmem:[#allocation7 + $0x118] sm:$0xff]   ;;  %v1019_v19 = vld [vmem:[#allocation7 + $0x148] sm:$0xff]  }
  0x56   :  { %910 = vmatprep.subr.bf16.mxu0 %v1127_v0  ;;  %898 = vmatprep.subr.bf16.mxu1 %v1127_v0 }
  0x58   :  { %875 = vmatmul.mubr.bf16.vlgmr.msra.gmra.mrb[0].mxu0 %v152_v21  ;;  %v1021_v21 = vld [vmem:[#allocation7 + $0x158] sm:$0xff]  }
  0x59   :  { %911 = vmatpush3.bf16.msra.mxu0 %v995_v20  ;;  %926 = vmatprep.mubr.msk.bf16.mxu0 %vm1128_vm0, %v1127_v0  ;;  %v1020_v20 = vld [vmem:[#allocation7 + $0x150] sm:$0xff]  }
  0x5a   :  { %899 = vmatpush3.bf16.msra.mxu1 %v994_v22  ;;  %912 = vmatprep.subr.bf16.mxu0 %v1127_v0 }
  0x5b   :  { %900 = vmatprep.subr.bf16.mxu1 %v1127_v0 }
  0x5d   :  { %913 = vmatpush3.bf16.msra.mxu0 %v997_v23 }
  0x5e   :  { %901 = vmatpush3.bf16.msra.mxu1 %v996_v24  ;;  %914 = vmatprep.subr.bf16.mxu0 %v1127_v0 }
  0x5f   :  { %902 = vmatprep.subr.bf16.mxu1 %v1127_v0 }
  0x61   :  { %915 = vmatpush3.bf16.msra.mxu0 %v999_v25 }
  0x62   :  { %903 = vmatpush3.bf16.msra.mxu1 %v998_v26  ;;  %916 = vmatprep.subr.bf16.mxu0 %v1127_v0 }
  0x63   :  { %904 = vmatprep.subr.bf16.mxu1 %v1127_v0 }
  0x65   :  { %917 = vmatpush3.bf16.msra.mxu0 %v1001_v28 }
  0x66   :  { %905 = vmatpush3.bf16.msra.mxu1 %v1000_v27  ;;  %918 = vmatprep.subr.bf16.mxu0 %v1127_v0  ;;  %v789_v27 = vld [vmem:[%s1283_s3 + $0x5] ss:$0 sm:$0xff] }
  0x67   :  { %930 = vmatprep.subr.bf16.mxu1 %v1127_v0 }
  0x69   :  { %919 = vmatpush3.bf16.msra.mxu0 %v1002_v29 }
  0x6a   :  { %920 = vmatprep.subr.bf16.mxu0 %v1127_v0 }
  0x6d   :  { %921 = vmatpush3.bf16.msra.mxu0 %v1003_v30  ;;  %v790_v30 = vld [vmem:[%s1283_s3 + $0x6] ss:$0 sm:$0xff] }
  0x6e   :  { %922 = vmatprep.subr.bf16.mxu0 %v1127_v0 }
  0x71   :  { %923 = vmatpush3.bf16.msra.mxu0 %v1004_v31 }
  0x72   :  { %924 = vmatprep.subr.bf16.mxu0 %v1127_v0 }
  0x75   :  { %925 = vmatpush3.bf16.msra.mxu0 %v1005_v32 }
  0x76   :  { %950 = vmatprep.subr.bf16.mxu0 %v1127_v0 }
 0x11b   :  { %v313_v34 = vpop.f32.mrb[0].mxu1 }
 0x11c   :  { %v314_v35 = vadd.f32 %v765_v33, %v313_v34  ;;  %v888_v36 = vpop.f32.mrb[1].mxu1 }
 0x11d   :  { %v316_v37 = vpop.f32.mrb[2].mxu1 }
 0x11e   :  { %v319_v38 = vpack.c.bf16 %v314_v35, %v314_v35  ;;  %v889_v39 = vpop.f32.mrb[3].mxu1 }
 0x120   :  { %907 = vmatmul.mubr.bf16.vlgmr.msra.gmra.mrb[4].mxu1 %v319_v38 }
 0x121   :  { %946 = vmatprep.mubr.msk.bf16.mxu1 %vm1128_vm0, %v1127_v0  ;;  %931 = vmatpush3.bf16.msra.mxu1 %v1010_v10 }
 0x122   :  { %932 = vmatprep.subr.bf16.mxu1 %v1127_v0 }
 0x125   :  { %933 = vmatpush3.bf16.msra.mxu1 %v1012_v12 }
 0x126   :  { %934 = vmatprep.subr.bf16.mxu1 %v1127_v0 }
 0x129   :  { %935 = vmatpush3.bf16.msra.mxu1 %v1014_v14 }
 0x12a   :  { %936 = vmatprep.subr.bf16.mxu1 %v1127_v0 }
 0x12b   :  { %v241_v41 = vpop.f32.mrb[0].mxu0 }
 0x12c   :  { %v242_v42 = vadd.f32 %v756_v40, %v241_v41  ;;  %v876_v43 = vpop.f32.mrb[1].mxu0 }
 0x12d   :  { %v244_v44 = vpop.f32.mrb[2].mxu0  ;;  %937 = vmatpush3.bf16.msra.mxu1 %v1016_v16 }
 0x12e   :  { %v412_v45 = vpack.c.bf16 %v242_v42, %v242_v42  ;;  %v877_v46 = vpop.f32.mrb[3].mxu0  ;;  %938 = vmatprep.subr.bf16.mxu1 %v1127_v0  ;;  %v807_v44 = vld [vmem:[%s1283_s3 + $0x4] ss:$0 sm:$0xff]  ;;  %s746_s3 = sshll.u32 %s1129_s11, 4  ;;  %s747_s3 = int_to_ptr.vmem [resolvable:$true] %s746_s3 }
 0x12f   :  { %s1094_s12 = scalar_lea.vmem %s747_s3, 128  ;;  %p1099_p11 = scmp.lt.s32.totalorder %s747_s3, %s747_s3 }
 0x130   :  { %927 = vmatmul.mubr.bf16.vlgmr.msra.gmra.mrb[4].mxu0 %v412_v45  ;;  %p1095_p10 = scmp.ne.s32.totalorder %s747_s3, %s1094_s12  ;;  %p1100_p12 = scmp.lt.s32.totalorder %s1094_s12, %s1094_s12 }
 0x131   :  { %966 = vmatprep.mubr.msk.bf16.mxu0 %vm1128_vm0, %v1127_v0  ;;  %951 = vmatpush3.bf16.msra.mxu0 %v1006_v61 }
 0x132   :  { %952 = vmatprep.subr.bf16.mxu0 %v1127_v0  ;;  %939 = vmatpush3.bf16.msra.mxu1 %v1018_v18  ;;  %p1101_p13 = por %p1100_p12, %p1099_p11 }
 0x133   :  { %940 = vmatprep.subr.bf16.mxu1 %v1127_v0 }
 0x134   :  { %p1102_p0 = pnand %p1101_p13, %p1095_p10 }
 0x135   :  { %953 = vmatpush3.bf16.msra.mxu0 %v1007_v62 }
 0x136   :  { %954 = vmatprep.subr.bf16.mxu0 %v1127_v0  ;;  %941 = vmatpush3.bf16.msra.mxu1 %v1019_v19 }
 0x137   :  { %942 = vmatprep.subr.bf16.mxu1 %v1127_v0 }
 0x139   :  { %955 = vmatpush3.bf16.msra.mxu0 %v1008_v7 }
 0x13a   :  { %956 = vmatprep.subr.bf16.mxu0 %v1127_v0  ;;  %943 = vmatpush3.bf16.msra.mxu1 %v1020_v20 }
 0x13b   :  { %944 = vmatprep.subr.bf16.mxu1 %v1127_v0 }
 0x13d   :  { %957 = vmatpush3.bf16.msra.mxu0 %v1009_v9 }
 0x13e   :  { %958 = vmatprep.subr.bf16.mxu0 %v1127_v0  ;;  %945 = vmatpush3.bf16.msra.mxu1 %v1021_v21 }
 0x141   :  { %959 = vmatpush3.bf16.msra.mxu0 %v1011_v11 }
 0x142   :  { %960 = vmatprep.subr.bf16.mxu0 %v1127_v0 }
 0x145   :  { %961 = vmatpush3.bf16.msra.mxu0 %v1013_v13 }
 0x146   :  { %962 = vmatprep.subr.bf16.mxu0 %v1127_v0 }
 0x149   :  { %963 = vmatpush3.bf16.msra.mxu0 %v1015_v15 }
 0x14a   :  { %964 = vmatprep.subr.bf16.mxu0 %v1127_v0 }
 0x14d   :  { %965 = vmatpush3.bf16.msra.mxu0 %v1017_v17 }
 0x1f3   :  { %v406_v48 = vpop.f32.mrb[4].mxu1 }
 0x1f4   :  { %v407_v49 = vadd.f32 %v771_v47, %v406_v48  ;;  %v908_v50 = vpop.f32.mrb[5].mxu1 }
 0x1f5   :  { %v409_v51 = vpop.f32.mrb[6].mxu1 }
 0x1f6   :  { %v505_v52 = vadd.f32 %v407_v49, %v242_v42  ;;  %v909_v53 = vpop.f32.mrb[7].mxu1 }
 0x1f8   :  { %506 = vadd.xlane.f32.xlu0 %v505_v52 }
 0x203   :  { %v499_v55 = vpop.f32.mrb[4].mxu0 }
 0x204   :  { %v500_v56 = vadd.f32 %v780_v54, %v499_v55  ;;  %v928_v57 = vpop.f32.mrb[5].mxu0 }
 0x205   :  { %v502_v58 = vpop.f32.mrb[6].mxu0 }
 0x206   :  { %v929_v59 = vpop.f32.mrb[7].mxu0  ;;  %v528_v60 = vadd.f32 %v500_v56, %v314_v35 }
 0x208   :  { %529 = vadd.xlane.f32.xlu0 %v528_v60 }
 0x285   :  { %v507_v63 = vpop.xlane.xlu0 %506 }
 0x286   :  { %v509_v1 = vmul.f32 0.0078125, %v507_v63 }
 0x288   :  { %v510_v2 = vsub.f32 %v505_v52, %v509_v1 }
 0x28a   :  { %v511_v3 = vmul.f32 %v510_v2, %v510_v2 }
 0x28c   :  { %512 = vadd.xlane.f32.xlu1 %v511_v3 }
 0x295   :  { %v530_v4 = vpop.xlane.xlu0 %529 }
 0x296   :  { %v531_v5 = vmul.f32 0.0078125, %v530_v4 }
 0x298   :  { %v532_v6 = vsub.f32 %v528_v60, %v531_v5 }
 0x29a   :  { %v533_v8 = vmul.f32 %v532_v6, %v532_v6 }
 0x29c   :  { %534 = vadd.xlane.f32.xlu1 %v533_v8 }
 0x319   :  { %v513_v22 = vpop.xlane.xlu1 %512 }
 0x31a   :  { %v514_v23 = vmul.f32 0.0078125, %v513_v22 }
 0x31c   :  { %v515_v24 = vadd.f32 1e-05, %v514_v23 }
 0x31e   :  { %1022 = vrsqrt.f32 %v515_v24 }
 0x328   :  { %v1023_v25 = vpop.eup %1022 }
 0x329   :  { %v535_v26 = vpop.xlane.xlu1 %534  ;;  %v517_v29 = vmul.f32 %v1023_v25, %v510_v2 }
 0x32a   :  { %v536_v28 = vmul.f32 0.0078125, %v535_v26 }
 0x32b   :  { %v522_v32 = vmul.f32 %v789_v27, %v517_v29 }
 0x32c   :  { %v537_v31 = vadd.f32 1e-05, %v536_v28 }
 0x32d   :  { %v527_v0 = vadd.f32 %v790_v30, %v522_v32 }
 0x32e   :  { %1024 = vrsqrt.f32 %v537_v31 }
 0x32f   :  { %v542_v33 = vpack.c.bf16 %v527_v0, %v527_v0 }
 0x331   :  { %967 = vmatmul.mubr.bf16.vlgmr.msra.gmra.mrb[8].mxu0 %v542_v33 }
 0x338   :  { %v1025_v34 = vpop.eup %1024 }
 0x339   :  { %v539_v35 = vmul.f32 %v1025_v34, %v532_v6 }
 0x33b   :  { %v540_v36 = vmul.f32 %v789_v27, %v539_v35 }
 0x33d   :  { %v541_v37 = vadd.f32 %v790_v30, %v540_v36 }
 0x33f   :  { %v543_v38 = vpack.c.bf16 %v541_v37, %v541_v37 }
 0x341   :  { %947 = vmatmul.mubr.bf16.vlgmr.msra.gmra.mrb[8].mxu1 %v543_v38 }
 0x404   :  { %v714_v39 = vpop.f32.mrb[8].mxu0 }
 0x405   :  { %v968_v40 = vpop.f32.mrb[9].mxu0 }
 0x406   :  { %v717_v41 = vpop.f32.mrb[10].mxu0 }
 0x407   :  { %v969_v42 = vpop.f32.mrb[11].mxu0 }
 0x414   :  { %v626_v43 = vpop.f32.mrb[8].mxu1 }
 0x415   :  { %v715_v45 = vadd.f32 %v714_v39, %v626_v43  ;;  %v948_v46 = vpop.f32.mrb[9].mxu1 }
 0x416   :  { %v629_v47 = vpop.f32.mrb[10].mxu1 }
 0x417   :  { %v949_v48 = vpop.f32.mrb[11].mxu1  ;;  %v724_v49 = vadd.f32 %v807_v44, %v715_v45 }
 0x419   :  { %725 = vadd.xlane.f32.xlu0 %v724_v49 }
 0x4a6   :  { %v726_v50 = vpop.xlane.xlu0 %725 }
 0x4a7   :  { %v727_v51 = vmul.f32 0.0078125, %v726_v50 }
 0x4a9   :  { %v728_v52 = vsub.f32 %v724_v49, %v727_v51 }
 0x4ab   :  { %v729_v53 = vmul.f32 %v728_v52, %v728_v52 }
 0x4ad   :  { %730 = vadd.xlane.f32.xlu1 %v729_v53 }
 0x53a   :  { %v731_v54 = vpop.xlane.xlu1 %730 }
 0x53b   :  { %v732_v55 = vmul.f32 0.0078125, %v731_v54 }
 0x53d   :  { %v733_v56 = vadd.f32 1e-05, %v732_v55 }
 0x53f   :  { %1026 = vrsqrt.f32 %v733_v56 }
 0x549   :  { %v1027_v57 = vpop.eup %1026 }
 0x54a   :  { %v735_v58 = vmul.f32 %v1027_v57, %v728_v52 }
 0x54c   :  { %v736_v59 = vmul.f32 %v789_v27, %v735_v58 }
 0x54e   :  { %v737_v60 = vadd.f32 %v790_v30, %v736_v59 }
 0x550   :  { %v738_v61 = vmax.f32 %v737_v60, 0.0 }
 0x552   :  { %739 = vst [vmem:[#allocation8] sm:$0xff] %v738_v61 }
 0x553   :  { %1105 = shalt.err (!%p1102_p0)
}
 0x554   :  { %s1106_s15 = scalar_lea.hbm %s1284_s4, 128 }
 0x555   :  { %p1107_p1 = scmp.ne.s32.totalorder %s1284_s4, %s1106_s15  ;;  %p1110_p2 = scmp.lt.u32.totalorder %s1106_s15, %s1284_s4 }
 0x557   :  { %p1112_p3 = pnand %p1110_p2, %p1107_p1 }
 0x559   :  { %1115 = shalt.err (!%p1112_p3)
}
 0x55a   :  { %749 = dma.vmem_to_hbm [thread:$0]  %s747_s3, 128, %s1284_s4, [#allocation4]  }
 0x55b   :  { %1120 = dma.done.wait [#allocation4], 128  }
 0x55c   :  { %1121 = vsyncadd [#allocation4], 4294967168 }
 0x55d   :  { %753 = vsyncpa [#allocation3], 1 }
 0x55e   :  { %754 = vsyncpa [#allocation6], 1 }
 0x55f   :  { %755 = vsyncpa [#allocation4], 1 }

</bundles_post_ra>
